<compile_context>
chip_gen: v7x
topology: tpu7x:2x2x1
jax: 0.10.0
libtpu: 0.0.40
codegen_flags: <defaults>
</compile_context>

<pallas_src>
import jax
import jax.numpy as jnp
from jax import lax
from jax.experimental import pallas as pl
from jax.experimental.pallas import tpu as pltpu

REL_NAMES = ["DDI", "DPI", "PPI"]
CANONICAL_ETYPES = [
    ("drug", "DDI", "drug"),
    ("drug", "DPI", "protein"),
    ("protein", "PPI", "protein"),
]

FPAD = 128                      # feature axis padded to a full lane register
EPAD = 128                      # edges-per-etype padded to full lanes (lane-dense rows)
N_SCORE_SETS = 2 * len(CANONICAL_ETYPES)   # pos/neg x 3 etypes = 6
NSETS = 8                       # score rows padded to a sublane multiple


# ------------------------------------------------------------------ kernel

def _graphconv(a_bf16, x_bf16, w_bf16, b_f32):
    # dgl.nn.GraphConv(norm='right', activation=relu):
    #   h_dst = relu( ((A @ x_src) / clamp(in_degree, 1)) @ W + b )
    deg = jnp.sum(a_bf16.astype(jnp.float32), axis=1, keepdims=True)
    inv_deg = pl.reciprocal(jnp.maximum(deg, 1.0), approx=True)      # EUP slot, ~free
    agg = jnp.dot(a_bf16, x_bf16, preferred_element_type=jnp.float32) * inv_deg
    h = jnp.dot(agg.astype(jnp.bfloat16), w_bf16,
                preferred_element_type=jnp.float32) + b_f32
    return jnp.maximum(h, 0.0)    # relu per relation (before hetero 'sum')


def fused_forward_kernel(a_ddi_ref, a_dpi_ref, a_ppi_ref,
                         x_d_ref, x_p_ref,
                         w_ddi_ref, w_dpi_ref, w_ppi_ref,
                         b_ddi_ref, b_dpi_ref, b_ppi_ref,
                         u_idx_ref, v_idx_ref,
                         o_ref):
    # ---- HeteroGraphConv (default 'sum' aggregation per destination node type) ----
    h_drug = _graphconv(a_ddi_ref[...], x_d_ref[...], w_ddi_ref[...], b_ddi_ref[...])
    h_prot = (_graphconv(a_dpi_ref[...], x_d_ref[...], w_dpi_ref[...], b_dpi_ref[...]) +
              _graphconv(a_ppi_ref[...], x_p_ref[...], w_ppi_ref[...], b_ppi_ref[...]))

    h_all = jnp.concatenate([h_drug, h_prot], axis=0)                # [Nd+Np, FPAD]

    # ---- ScorePredictor: u_dot_v == G[u, v] with G = h_all @ h_all^T (computed once) ----
    gram = lax.dot_general(h_all, h_all, (((1,), (1,)), ((), ())),
                           preferred_element_type=jnp.float32)        # [Ntot, Ntot]

    ntot = h_all.shape[0]
    u_idx = u_idx_ref[...]                                            # [NSETS, EPAD] int32
    v_idx = v_idx_ref[...]
    node_iota = lax.broadcasted_iota(jnp.int32, (ntot, EPAD), 0)

    o_ref[...] = jnp.zeros_like(o_ref)
    for s in range(N_SCORE_SETS):                                     # static unrolled (6 sets)
        ou = (node_iota == u_idx[s][None, :]).astype(jnp.float32)     # [Ntot, EPAD]
        ov = (node_iota == v_idx[s][None, :]).astype(jnp.float32)
        gv = jnp.dot(gram, ov, preferred_element_type=jnp.float32)    # [Ntot, EPAD]
        # score[e] = sum_n ou[n, e] * (G @ ov)[n, e] = G[u_e, v_e]
        o_ref[pl.ds(s, 1), :] = jnp.sum(ou * gv, axis=0, keepdims=True)  # full-lane row store


# ------------------------------------------------------------------ wrapper

def _full_spec(shape):
    nd = len(shape)
    return pl.BlockSpec(shape, lambda i, _nd=nd: (0,) * _nd)


def fused_forward(a_ddi, a_dpi, a_ppi, x_d, x_p, ws, bs, u_idx, v_idx):
    # TODO(synk): for production-size graphs, replace grid=(1,) with a (dst_tile, src_tile)
    # grid (src/reduction axis last + 'arbitrary', f32 VMEM accumulator, 'parallel' dst axis
    # for v7x megacore) and budget tiles against v7x's 64 MiB VMEM.
    args = [a_ddi, a_dpi, a_ppi, x_d, x_p,
            ws[0], ws[1], ws[2], bs[0], bs[1], bs[2], u_idx, v_idx]
    return pl.pallas_call(
        fused_forward_kernel,
        out_shape=jax.ShapeDtypeStruct((NSETS, EPAD), jnp.float32),
        grid=(1,),
        in_specs=[_full_spec(a.shape) for a in args],
        out_specs=_full_spec((NSETS, EPAD)),
        compiler_params=pltpu.CompilerParams(dimension_semantics=("arbitrary",)),
    )(*args)


# ------------------------------------------------------------------ model

def init_params(key, in_features, out_features):
    params = {}
    for i, rel in enumerate(REL_NAMES):
        kw = jax.random.fold_in(key, i)
        w = jax.random.normal(kw, (in_features, out_features), jnp.float32) * 0.1
        b = jnp.zeros((1, out_features), jnp.float32)
        params[rel] = (w, b)
    return params


def _pad_cast(arr, rows, cols, dtype):
    out = jnp.zeros((rows, cols), dtype)
    return out.at[:arr.shape[0], :arr.shape[1]].set(arr.astype(dtype))


def model_forward(params, graph, x):
    """graph: dense adjacencies 'A_DDI' [Nd,Nd], 'A_DPI' [Np,Nd], 'A_PPI' [Np,Np]
    (A[dst,src]) and 'pos_edges'/'neg_edges' dicts {canonical_etype: (src_ids, dst_ids)}.
    x: {'drug': [Nd,Fin], 'protein': [Np,Fin]}."""
    nd = x["drug"].shape[0]
    np_ = x["protein"].shape[0]

    # bf16 at the kernel boundary (binary adjacency exact; f32 accumulation in-kernel)
    a_ddi = graph["A_DDI"].astype(jnp.bfloat16)
    a_dpi = graph["A_DPI"].astype(jnp.bfloat16)
    a_ppi = graph["A_PPI"].astype(jnp.bfloat16)
    x_d = _pad_cast(x["drug"], nd, FPAD, jnp.bfloat16)
    x_p = _pad_cast(x["protein"], np_, FPAD, jnp.bfloat16)

    ws, bs = [], []
    for rel in REL_NAMES:
        w, b = params[rel]
        ws.append(_pad_cast(w, FPAD, FPAD, jnp.bfloat16))   # zero-padded -> exact
        bs.append(_pad_cast(b, 1, FPAD, jnp.float32))

    # Global node ids: drugs 0..Nd-1, proteins Nd..Nd+Np-1; one lane-dense row per score set.
    offset = {"drug": 0, "protein": nd}
    u_rows, v_rows = [], []
    for edges in (graph["pos_edges"], graph["neg_edges"]):
        for st, rel, dt in CANONICAL_ETYPES:
            u, v = edges[(st, rel, dt)]
            e = u.shape[0]
            u_rows.append(jnp.zeros((EPAD,), jnp.int32).at[:e].set(u.astype(jnp.int32) + offset[st]))
            v_rows.append(jnp.zeros((EPAD,), jnp.int32).at[:e].set(v.astype(jnp.int32) + offset[dt]))
    while len(u_rows) < NSETS:
        u_rows.append(jnp.zeros((EPAD,), jnp.int32))
        v_rows.append(jnp.zeros((EPAD,), jnp.int32))
    u_idx = jnp.stack(u_rows, axis=0)
    v_idx = jnp.stack(v_rows, axis=0)

    scores = fused_forward(a_ddi, a_dpi, a_ppi, x_d, x_p, ws, bs, u_idx, v_idx)

    pos, neg = {}, {}
    for i, et in enumerate(CANONICAL_ETYPES):
        e_pos = graph["pos_edges"][et][0].shape[0]
        e_neg = graph["neg_edges"][et][0].shape[0]
        pos[et] = scores[i, :e_pos].reshape(e_pos, 1)
        neg[et] = scores[len(CANONICAL_ETYPES) + i, :e_neg].reshape(e_neg, 1)
    return pos, neg


# ------------------------------------------------------------------ main

if __name__ == "__main__":
    IN_FEATURES, OUT_FEATURES = 32, 32
    ND, NP, E = 16, 16, 8  # num drugs, num proteins, edges per etype

    key = jax.random.PRNGKey(0)
    k_par, k_feat_d, k_feat_p, k_adj, k_edges = jax.random.split(key, 5)

    params = init_params(k_par, IN_FEATURES, OUT_FEATURES)

    x = {
        "drug": jax.random.normal(k_feat_d, (ND, IN_FEATURES), jnp.float32),
        "protein": jax.random.normal(k_feat_p, (NP, IN_FEATURES), jnp.float32),
    }

    ka1, ka2, ka3 = jax.random.split(k_adj, 3)
    graph = {
        "A_DDI": (jax.random.uniform(ka1, (ND, ND)) < 0.3).astype(jnp.float32),
        "A_DPI": (jax.random.uniform(ka2, (NP, ND)) < 0.3).astype(jnp.float32),
        "A_PPI": (jax.random.uniform(ka3, (NP, NP)) < 0.3).astype(jnp.float32),
    }

    def rand_edges(k, nsrc, ndst):
        ku, kv = jax.random.split(k)
        return (jax.random.randint(ku, (E,), 0, nsrc),
                jax.random.randint(kv, (E,), 0, ndst))

    ntype_count = {"drug": ND, "protein": NP}
    ekeys = jax.random.split(k_edges, 2 * len(CANONICAL_ETYPES))
    graph["pos_edges"] = {
        et: rand_edges(ekeys[i], ntype_count[et[0]], ntype_count[et[2]])
        for i, et in enumerate(CANONICAL_ETYPES)
    }
    graph["neg_edges"] = {
        et: rand_edges(ekeys[len(CANONICAL_ETYPES) + i], ntype_count[et[0]], ntype_count[et[2]])
        for i, et in enumerate(CANONICAL_ETYPES)
    }

    pos_scores, neg_scores = model_forward(params, graph, x)
    jax.block_until_ready((pos_scores, neg_scores))

    for et in CANONICAL_ETYPES:
        assert pos_scores[et].shape == (E, 1) and neg_scores[et].shape == (E, 1)
    print("KERNEL_OK")
</pallas_src>

<mosaic_0001>
module attributes {stable_mosaic.version = 11 : i64} {
  func.func @fused_forward_kernel(%arg0: i32, %arg1: memref<16x16xbf16, #tpu.memory_space<vmem>>, %arg2: memref<16x16xbf16, #tpu.memory_space<vmem>>, %arg3: memref<16x16xbf16, #tpu.memory_space<vmem>>, %arg4: memref<16x128xbf16, #tpu.memory_space<vmem>>, %arg5: memref<16x128xbf16, #tpu.memory_space<vmem>>, %arg6: memref<128x128xbf16, #tpu.memory_space<vmem>>, %arg7: memref<128x128xbf16, #tpu.memory_space<vmem>>, %arg8: memref<128x128xbf16, #tpu.memory_space<vmem>>, %arg9: memref<1x128xf32, #tpu.memory_space<vmem>>, %arg10: memref<1x128xf32, #tpu.memory_space<vmem>>, %arg11: memref<1x128xf32, #tpu.memory_space<vmem>>, %arg12: memref<8x128xi32, #tpu.memory_space<vmem>>, %arg13: memref<8x128xi32, #tpu.memory_space<vmem>>, %arg14: memref<8x128xf32, #tpu.memory_space<vmem>>) attributes {dimension_semantics = [#tpu.dimension_semantics<arbitrary>], iteration_bounds = array<i64: 1>, scalar_prefetch = 0 : i64, scratch_operands = 0 : i64, tpu.core_type = #tpu.core_type<tc>, window_params = [{pipeline_mode = #tpu.pipeline_mode<synchronous>, transform_indices = @transform_0, window_bounds = array<i64: 16, 16>}, {pipeline_mode = #tpu.pipeline_mode<synchronous>, transform_indices = @transform_1, window_bounds = array<i64: 16, 16>}, {pipeline_mode = #tpu.pipeline_mode<synchronous>, transform_indices = @transform_2, window_bounds = array<i64: 16, 16>}, {pipeline_mode = #tpu.pipeline_mode<synchronous>, transform_indices = @transform_3, window_bounds = array<i64: 16, 128>}, {pipeline_mode = #tpu.pipeline_mode<synchronous>, transform_indices = @transform_4, window_bounds = array<i64: 16, 128>}, {pipeline_mode = #tpu.pipeline_mode<synchronous>, transform_indices = @transform_5, window_bounds = array<i64: 128, 128>}, {pipeline_mode = #tpu.pipeline_mode<synchronous>, transform_indices = @transform_6, window_bounds = array<i64: 128, 128>}, {pipeline_mode = #tpu.pipeline_mode<synchronous>, transform_indices = @transform_7, window_bounds = array<i64: 128, 128>}, {pipeline_mode = #tpu.pipeline_mode<synchronous>, transform_indices = @transform_8, window_bounds = array<i64: 1, 128>}, {pipeline_mode = #tpu.pipeline_mode<synchronous>, transform_indices = @transform_9, window_bounds = array<i64: 1, 128>}, {pipeline_mode = #tpu.pipeline_mode<synchronous>, transform_indices = @transform_10, window_bounds = array<i64: 1, 128>}, {pipeline_mode = #tpu.pipeline_mode<synchronous>, transform_indices = @transform_11, window_bounds = array<i64: 8, 128>}, {pipeline_mode = #tpu.pipeline_mode<synchronous>, transform_indices = @transform_12, window_bounds = array<i64: 8, 128>}, {pipeline_mode = #tpu.pipeline_mode<synchronous>, transform_indices = @transform_13, window_bounds = array<i64: 8, 128>}]} {
    %c0 = arith.constant 0 : index
    %c0_0 = arith.constant 0 : index
    %0 = vector.load %arg1[%c0, %c0_0] : memref<16x16xbf16, #tpu.memory_space<vmem>>, vector<16x16xbf16>
    %c0_1 = arith.constant 0 : index
    %c0_2 = arith.constant 0 : index
    %1 = vector.load %arg4[%c0_1, %c0_2] : memref<16x128xbf16, #tpu.memory_space<vmem>>, vector<16x128xbf16>
    %c0_3 = arith.constant 0 : index
    %c0_4 = arith.constant 0 : index
    %2 = vector.load %arg6[%c0_3, %c0_4] : memref<128x128xbf16, #tpu.memory_space<vmem>>, vector<128x128xbf16>
    %c0_5 = arith.constant 0 : index
    %c0_6 = arith.constant 0 : index
    %3 = vector.load %arg9[%c0_5, %c0_6] : memref<1x128xf32, #tpu.memory_space<vmem>>, vector<1x128xf32>
    %4 = arith.extf %0 : vector<16x16xbf16> to vector<16x16xf32>
    %cst = arith.constant dense<0.000000e+00> : vector<16xf32>
    %5 = vector.multi_reduction <add>, %4, %cst [1] : vector<16x16xf32> to vector<16xf32>
    %6 = vector.shape_cast %5 : vector<16xf32> to vector<16x1xf32>
    %cst_7 = arith.constant 1.000000e+00 : f32
    %7 = vector.broadcast %cst_7 : f32 to vector<16x1xf32>
    %8 = arith.maximumf %6, %7 : vector<16x1xf32>
    %9 = tpu.reciprocal %8 {approx = true} : vector<16x1xf32> -> vector<16x1xf32>
    %cst_8 = arith.constant dense<0.000000e+00> : vector<16x128xf32>
    %10 = tpu.matmul %0, %1, %cst_8 {dimension_numbers = #tpu.dot_dimension_numbers<[1], [0], [0], [1], [0, 0, 1, 1], [], []>} : vector<16x16xbf16>, vector<16x128xbf16>, vector<16x128xf32> -> vector<16x128xf32>
    %11 = vector.broadcast %9 : vector<16x1xf32> to vector<16x128xf32>
    %12 = arith.mulf %10, %11 : vector<16x128xf32>
    %13 = arith.truncf %12 : vector<16x128xf32> to vector<16x128xbf16>
    %cst_9 = arith.constant dense<0.000000e+00> : vector<16x128xf32>
    %14 = tpu.matmul %13, %2, %cst_9 {dimension_numbers = #tpu.dot_dimension_numbers<[1], [0], [0], [1], [0, 0, 1, 1], [], []>} : vector<16x128xbf16>, vector<128x128xbf16>, vector<16x128xf32> -> vector<16x128xf32>
    %15 = vector.broadcast %3 : vector<1x128xf32> to vector<16x128xf32>
    %16 = arith.addf %14, %15 : vector<16x128xf32>
    %cst_10 = arith.constant 0.000000e+00 : f32
    %17 = vector.broadcast %cst_10 : f32 to vector<16x128xf32>
    %18 = arith.maximumf %16, %17 : vector<16x128xf32>
    %c0_11 = arith.constant 0 : index
    %c0_12 = arith.constant 0 : index
    %19 = vector.load %arg2[%c0_11, %c0_12] : memref<16x16xbf16, #tpu.memory_space<vmem>>, vector<16x16xbf16>
    %c0_13 = arith.constant 0 : index
    %c0_14 = arith.constant 0 : index
    %20 = vector.load %arg4[%c0_13, %c0_14] : memref<16x128xbf16, #tpu.memory_space<vmem>>, vector<16x128xbf16>
    %c0_15 = arith.constant 0 : index
    %c0_16 = arith.constant 0 : index
    %21 = vector.load %arg7[%c0_15, %c0_16] : memref<128x128xbf16, #tpu.memory_space<vmem>>, vector<128x128xbf16>
    %c0_17 = arith.constant 0 : index
    %c0_18 = arith.constant 0 : index
    %22 = vector.load %arg10[%c0_17, %c0_18] : memref<1x128xf32, #tpu.memory_space<vmem>>, vector<1x128xf32>
    %23 = arith.extf %19 : vector<16x16xbf16> to vector<16x16xf32>
    %cst_19 = arith.constant dense<0.000000e+00> : vector<16xf32>
    %24 = vector.multi_reduction <add>, %23, %cst_19 [1] : vector<16x16xf32> to vector<16xf32>
    %25 = vector.shape_cast %24 : vector<16xf32> to vector<16x1xf32>
    %cst_20 = arith.constant 1.000000e+00 : f32
    %26 = vector.broadcast %cst_20 : f32 to vector<16x1xf32>
    %27 = arith.maximumf %25, %26 : vector<16x1xf32>
    %28 = tpu.reciprocal %27 {approx = true} : vector<16x1xf32> -> vector<16x1xf32>
    %cst_21 = arith.constant dense<0.000000e+00> : vector<16x128xf32>
    %29 = tpu.matmul %19, %20, %cst_21 {dimension_numbers = #tpu.dot_dimension_numbers<[1], [0], [0], [1], [0, 0, 1, 1], [], []>} : vector<16x16xbf16>, vector<16x128xbf16>, vector<16x128xf32> -> vector<16x128xf32>
    %30 = vector.broadcast %28 : vector<16x1xf32> to vector<16x128xf32>
    %31 = arith.mulf %29, %30 : vector<16x128xf32>
    %32 = arith.truncf %31 : vector<16x128xf32> to vector<16x128xbf16>
    %cst_22 = arith.constant dense<0.000000e+00> : vector<16x128xf32>
    %33 = tpu.matmul %32, %21, %cst_22 {dimension_numbers = #tpu.dot_dimension_numbers<[1], [0], [0], [1], [0, 0, 1, 1], [], []>} : vector<16x128xbf16>, vector<128x128xbf16>, vector<16x128xf32> -> vector<16x128xf32>
    %34 = vector.broadcast %22 : vector<1x128xf32> to vector<16x128xf32>
    %35 = arith.addf %33, %34 : vector<16x128xf32>
    %cst_23 = arith.constant 0.000000e+00 : f32
    %36 = vector.broadcast %cst_23 : f32 to vector<16x128xf32>
    %37 = arith.maximumf %35, %36 : vector<16x128xf32>
    %c0_24 = arith.constant 0 : index
    %c0_25 = arith.constant 0 : index
    %38 = vector.load %arg3[%c0_24, %c0_25] : memref<16x16xbf16, #tpu.memory_space<vmem>>, vector<16x16xbf16>
    %c0_26 = arith.constant 0 : index
    %c0_27 = arith.constant 0 : index
    %39 = vector.load %arg5[%c0_26, %c0_27] : memref<16x128xbf16, #tpu.memory_space<vmem>>, vector<16x128xbf16>
    %c0_28 = arith.constant 0 : index
    %c0_29 = arith.constant 0 : index
    %40 = vector.load %arg8[%c0_28, %c0_29] : memref<128x128xbf16, #tpu.memory_space<vmem>>, vector<128x128xbf16>
    %c0_30 = arith.constant 0 : index
    %c0_31 = arith.constant 0 : index
    %41 = vector.load %arg11[%c0_30, %c0_31] : memref<1x128xf32, #tpu.memory_space<vmem>>, vector<1x128xf32>
    %42 = arith.extf %38 : vector<16x16xbf16> to vector<16x16xf32>
    %cst_32 = arith.constant dense<0.000000e+00> : vector<16xf32>
    %43 = vector.multi_reduction <add>, %42, %cst_32 [1] : vector<16x16xf32> to vector<16xf32>
    %44 = vector.shape_cast %43 : vector<16xf32> to vector<16x1xf32>
    %cst_33 = arith.constant 1.000000e+00 : f32
    %45 = vector.broadcast %cst_33 : f32 to vector<16x1xf32>
    %46 = arith.maximumf %44, %45 : vector<16x1xf32>
    %47 = tpu.reciprocal %46 {approx = true} : vector<16x1xf32> -> vector<16x1xf32>
    %cst_34 = arith.constant dense<0.000000e+00> : vector<16x128xf32>
    %48 = tpu.matmul %38, %39, %cst_34 {dimension_numbers = #tpu.dot_dimension_numbers<[1], [0], [0], [1], [0, 0, 1, 1], [], []>} : vector<16x16xbf16>, vector<16x128xbf16>, vector<16x128xf32> -> vector<16x128xf32>
    %49 = vector.broadcast %47 : vector<16x1xf32> to vector<16x128xf32>
    %50 = arith.mulf %48, %49 : vector<16x128xf32>
    %51 = arith.truncf %50 : vector<16x128xf32> to vector<16x128xbf16>
    %cst_35 = arith.constant dense<0.000000e+00> : vector<16x128xf32>
    %52 = tpu.matmul %51, %40, %cst_35 {dimension_numbers = #tpu.dot_dimension_numbers<[1], [0], [0], [1], [0, 0, 1, 1], [], []>} : vector<16x128xbf16>, vector<128x128xbf16>, vector<16x128xf32> -> vector<16x128xf32>
    %53 = vector.broadcast %41 : vector<1x128xf32> to vector<16x128xf32>
    %54 = arith.addf %52, %53 : vector<16x128xf32>
    %cst_36 = arith.constant 0.000000e+00 : f32
    %55 = vector.broadcast %cst_36 : f32 to vector<16x128xf32>
    %56 = arith.maximumf %54, %55 : vector<16x128xf32>
    %57 = arith.addf %37, %56 : vector<16x128xf32>
    %58 = tpu.concatenate %18, %57 in 0 : vector<16x128xf32>, vector<16x128xf32> -> vector<32x128xf32>
    %cst_37 = arith.constant dense<0.000000e+00> : vector<32x32xf32>
    %59 = tpu.matmul %58, %58, %cst_37 {dimension_numbers = #tpu.dot_dimension_numbers<[1], [1], [0], [0], [0, 0, 1, 0], [], []>} : vector<32x128xf32>, vector<32x128xf32>, vector<32x32xf32> -> vector<32x32xf32>
    %c0_38 = arith.constant 0 : index
    %c0_39 = arith.constant 0 : index
    %60 = vector.load %arg12[%c0_38, %c0_39] : memref<8x128xi32, #tpu.memory_space<vmem>>, vector<8x128xi32>
    %c0_40 = arith.constant 0 : index
    %c0_41 = arith.constant 0 : index
    %61 = vector.load %arg13[%c0_40, %c0_41] : memref<8x128xi32, #tpu.memory_space<vmem>>, vector<8x128xi32>
    %62 = tpu.iota {dimensions = array<i32: 0>} : vector<32x128xi32>
    %cst_42 = arith.constant 0.000000e+00 : f32
    %63 = vector.broadcast %cst_42 : f32 to vector<8x128xf32>
    %c0_43 = arith.constant 0 : index
    %c0_44 = arith.constant 0 : index
    %64 = vector.load %arg14[%c0_43, %c0_44] : memref<8x128xf32, #tpu.memory_space<vmem>>, vector<8x128xf32>
    tpu.vector_store %arg14[%c0_43, %c0_44], %63 {strides = array<i32>} : memref<8x128xf32, #tpu.memory_space<vmem>>, vector<8x128xf32>,
    %65 = vector.extract_strided_slice %60 {offsets = [0, 0], sizes = [1, 128], strides = [1, 1]} : vector<8x128xi32> to vector<1x128xi32>
    %66 = vector.shape_cast %65 : vector<1x128xi32> to vector<128xi32>
    %67 = vector.shape_cast %66 : vector<128xi32> to vector<1x128xi32>
    %68 = vector.broadcast %67 : vector<1x128xi32> to vector<32x128xi32>
    %69 = arith.cmpi eq, %62, %68 : vector<32x128xi32>
    %70 = arith.extui %69 : vector<32x128xi1> to vector<32x128xi32>
    %71 = arith.sitofp %70 : vector<32x128xi32> to vector<32x128xf32>
    %72 = vector.extract_strided_slice %61 {offsets = [0, 0], sizes = [1, 128], strides = [1, 1]} : vector<8x128xi32> to vector<1x128xi32>
    %73 = vector.shape_cast %72 : vector<1x128xi32> to vector<128xi32>
    %74 = vector.shape_cast %73 : vector<128xi32> to vector<1x128xi32>
    %75 = vector.broadcast %74 : vector<1x128xi32> to vector<32x128xi32>
    %76 = arith.cmpi eq, %62, %75 : vector<32x128xi32>
    %77 = arith.extui %76 : vector<32x128xi1> to vector<32x128xi32>
    %78 = arith.sitofp %77 : vector<32x128xi32> to vector<32x128xf32>
    %cst_45 = arith.constant dense<0.000000e+00> : vector<32x128xf32>
    %79 = tpu.matmul %59, %78, %cst_45 {dimension_numbers = #tpu.dot_dimension_numbers<[1], [0], [0], [1], [0, 0, 1, 1], [], []>} : vector<32x32xf32>, vector<32x128xf32>, vector<32x128xf32> -> vector<32x128xf32>
    %80 = arith.mulf %71, %79 : vector<32x128xf32>
    %cst_46 = arith.constant dense<0.000000e+00> : vector<128xf32>
    %81 = vector.multi_reduction <add>, %80, %cst_46 [0] : vector<32x128xf32> to vector<128xf32>
    %82 = vector.shape_cast %81 : vector<128xf32> to vector<1x128xf32>
    %c0_47 = arith.constant 0 : index
    %c0_48 = arith.constant 0 : index
    %83 = vector.load %arg14[%c0_47, %c0_48] : memref<8x128xf32, #tpu.memory_space<vmem>>, vector<1x128xf32>
    tpu.vector_store %arg14[%c0_47, %c0_48], %82 {strides = array<i32>} : memref<8x128xf32, #tpu.memory_space<vmem>>, vector<1x128xf32>,
    %84 = vector.extract_strided_slice %60 {offsets = [1, 0], sizes = [1, 128], strides = [1, 1]} : vector<8x128xi32> to vector<1x128xi32>
    %85 = vector.shape_cast %84 : vector<1x128xi32> to vector<128xi32>
    %86 = vector.shape_cast %85 : vector<128xi32> to vector<1x128xi32>
    %87 = vector.broadcast %86 : vector<1x128xi32> to vector<32x128xi32>
    %88 = arith.cmpi eq, %62, %87 : vector<32x128xi32>
    %89 = arith.extui %88 : vector<32x128xi1> to vector<32x128xi32>
    %90 = arith.sitofp %89 : vector<32x128xi32> to vector<32x128xf32>
    %91 = vector.extract_strided_slice %61 {offsets = [1, 0], sizes = [1, 128], strides = [1, 1]} : vector<8x128xi32> to vector<1x128xi32>
    %92 = vector.shape_cast %91 : vector<1x128xi32> to vector<128xi32>
    %93 = vector.shape_cast %92 : vector<128xi32> to vector<1x128xi32>
    %94 = vector.broadcast %93 : vector<1x128xi32> to vector<32x128xi32>
    %95 = arith.cmpi eq, %62, %94 : vector<32x128xi32>
    %96 = arith.extui %95 : vector<32x128xi1> to vector<32x128xi32>
    %97 = arith.sitofp %96 : vector<32x128xi32> to vector<32x128xf32>
    %cst_49 = arith.constant dense<0.000000e+00> : vector<32x128xf32>
    %98 = tpu.matmul %59, %97, %cst_49 {dimension_numbers = #tpu.dot_dimension_numbers<[1], [0], [0], [1], [0, 0, 1, 1], [], []>} : vector<32x32xf32>, vector<32x128xf32>, vector<32x128xf32> -> vector<32x128xf32>
    %99 = arith.mulf %90, %98 : vector<32x128xf32>
    %cst_50 = arith.constant dense<0.000000e+00> : vector<128xf32>
    %100 = vector.multi_reduction <add>, %99, %cst_50 [0] : vector<32x128xf32> to vector<128xf32>
    %101 = vector.shape_cast %100 : vector<128xf32> to vector<1x128xf32>
    %c1 = arith.constant 1 : index
    %c0_51 = arith.constant 0 : index
    %102 = vector.load %arg14[%c1, %c0_51] : memref<8x128xf32, #tpu.memory_space<vmem>>, vector<1x128xf32>
    tpu.vector_store %arg14[%c1, %c0_51], %101 {strides = array<i32>} : memref<8x128xf32, #tpu.memory_space<vmem>>, vector<1x128xf32>,
    %103 = vector.extract_strided_slice %60 {offsets = [2, 0], sizes = [1, 128], strides = [1, 1]} : vector<8x128xi32> to vector<1x128xi32>
    %104 = vector.shape_cast %103 : vector<1x128xi32> to vector<128xi32>
    %105 = vector.shape_cast %104 : vector<128xi32> to vector<1x128xi32>
    %106 = vector.broadcast %105 : vector<1x128xi32> to vector<32x128xi32>
    %107 = arith.cmpi eq, %62, %106 : vector<32x128xi32>
    %108 = arith.extui %107 : vector<32x128xi1> to vector<32x128xi32>
    %109 = arith.sitofp %108 : vector<32x128xi32> to vector<32x128xf32>
    %110 = vector.extract_strided_slice %61 {offsets = [2, 0], sizes = [1, 128], strides = [1, 1]} : vector<8x128xi32> to vector<1x128xi32>
    %111 = vector.shape_cast %110 : vector<1x128xi32> to vector<128xi32>
    %112 = vector.shape_cast %111 : vector<128xi32> to vector<1x128xi32>
    %113 = vector.broadcast %112 : vector<1x128xi32> to vector<32x128xi32>
    %114 = arith.cmpi eq, %62, %113 : vector<32x128xi32>
    %115 = arith.extui %114 : vector<32x128xi1> to vector<32x128xi32>
    %116 = arith.sitofp %115 : vector<32x128xi32> to vector<32x128xf32>
    %cst_52 = arith.constant dense<0.000000e+00> : vector<32x128xf32>
    %117 = tpu.matmul %59, %116, %cst_52 {dimension_numbers = #tpu.dot_dimension_numbers<[1], [0], [0], [1], [0, 0, 1, 1], [], []>} : vector<32x32xf32>, vector<32x128xf32>, vector<32x128xf32> -> vector<32x128xf32>
    %118 = arith.mulf %109, %117 : vector<32x128xf32>
    %cst_53 = arith.constant dense<0.000000e+00> : vector<128xf32>
    %119 = vector.multi_reduction <add>, %118, %cst_53 [0] : vector<32x128xf32> to vector<128xf32>
    %120 = vector.shape_cast %119 : vector<128xf32> to vector<1x128xf32>
    %c2 = arith.constant 2 : index
    %c0_54 = arith.constant 0 : index
    %121 = vector.load %arg14[%c2, %c0_54] : memref<8x128xf32, #tpu.memory_space<vmem>>, vector<1x128xf32>
    tpu.vector_store %arg14[%c2, %c0_54], %120 {strides = array<i32>} : memref<8x128xf32, #tpu.memory_space<vmem>>, vector<1x128xf32>,
    %122 = vector.extract_strided_slice %60 {offsets = [3, 0], sizes = [1, 128], strides = [1, 1]} : vector<8x128xi32> to vector<1x128xi32>
    %123 = vector.shape_cast %122 : vector<1x128xi32> to vector<128xi32>
    %124 = vector.shape_cast %123 : vector<128xi32> to vector<1x128xi32>
    %125 = vector.broadcast %124 : vector<1x128xi32> to vector<32x128xi32>
    %126 = arith.cmpi eq, %62, %125 : vector<32x128xi32>
    %127 = arith.extui %126 : vector<32x128xi1> to vector<32x128xi32>
    %128 = arith.sitofp %127 : vector<32x128xi32> to vector<32x128xf32>
    %129 = vector.extract_strided_slice %61 {offsets = [3, 0], sizes = [1, 128], strides = [1, 1]} : vector<8x128xi32> to vector<1x128xi32>
    %130 = vector.shape_cast %129 : vector<1x128xi32> to vector<128xi32>
    %131 = vector.shape_cast %130 : vector<128xi32> to vector<1x128xi32>
    %132 = vector.broadcast %131 : vector<1x128xi32> to vector<32x128xi32>
    %133 = arith.cmpi eq, %62, %132 : vector<32x128xi32>
    %134 = arith.extui %133 : vector<32x128xi1> to vector<32x128xi32>
    %135 = arith.sitofp %134 : vector<32x128xi32> to vector<32x128xf32>
    %cst_55 = arith.constant dense<0.000000e+00> : vector<32x128xf32>
    %136 = tpu.matmul %59, %135, %cst_55 {dimension_numbers = #tpu.dot_dimension_numbers<[1], [0], [0], [1], [0, 0, 1, 1], [], []>} : vector<32x32xf32>, vector<32x128xf32>, vector<32x128xf32> -> vector<32x128xf32>
    %137 = arith.mulf %128, %136 : vector<32x128xf32>
    %cst_56 = arith.constant dense<0.000000e+00> : vector<128xf32>
    %138 = vector.multi_reduction <add>, %137, %cst_56 [0] : vector<32x128xf32> to vector<128xf32>
    %139 = vector.shape_cast %138 : vector<128xf32> to vector<1x128xf32>
    %c3 = arith.constant 3 : index
    %c0_57 = arith.constant 0 : index
    %140 = vector.load %arg14[%c3, %c0_57] : memref<8x128xf32, #tpu.memory_space<vmem>>, vector<1x128xf32>
    tpu.vector_store %arg14[%c3, %c0_57], %139 {strides = array<i32>} : memref<8x128xf32, #tpu.memory_space<vmem>>, vector<1x128xf32>,
    %141 = vector.extract_strided_slice %60 {offsets = [4, 0], sizes = [1, 128], strides = [1, 1]} : vector<8x128xi32> to vector<1x128xi32>
    %142 = vector.shape_cast %141 : vector<1x128xi32> to vector<128xi32>
    %143 = vector.shape_cast %142 : vector<128xi32> to vector<1x128xi32>
    %144 = vector.broadcast %143 : vector<1x128xi32> to vector<32x128xi32>
    %145 = arith.cmpi eq, %62, %144 : vector<32x128xi32>
    %146 = arith.extui %145 : vector<32x128xi1> to vector<32x128xi32>
    %147 = arith.sitofp %146 : vector<32x128xi32> to vector<32x128xf32>
    %148 = vector.extract_strided_slice %61 {offsets = [4, 0], sizes = [1, 128], strides = [1, 1]} : vector<8x128xi32> to vector<1x128xi32>
    %149 = vector.shape_cast %148 : vector<1x128xi32> to vector<128xi32>
    %150 = vector.shape_cast %149 : vector<128xi32> to vector<1x128xi32>
    %151 = vector.broadcast %150 : vector<1x128xi32> to vector<32x128xi32>
    %152 = arith.cmpi eq, %62, %151 : vector<32x128xi32>
    %153 = arith.extui %152 : vector<32x128xi1> to vector<32x128xi32>
    %154 = arith.sitofp %153 : vector<32x128xi32> to vector<32x128xf32>
    %cst_58 = arith.constant dense<0.000000e+00> : vector<32x128xf32>
    %155 = tpu.matmul %59, %154, %cst_58 {dimension_numbers = #tpu.dot_dimension_numbers<[1], [0], [0], [1], [0, 0, 1, 1], [], []>} : vector<32x32xf32>, vector<32x128xf32>, vector<32x128xf32> -> vector<32x128xf32>
    %156 = arith.mulf %147, %155 : vector<32x128xf32>
    %cst_59 = arith.constant dense<0.000000e+00> : vector<128xf32>
    %157 = vector.multi_reduction <add>, %156, %cst_59 [0] : vector<32x128xf32> to vector<128xf32>
    %158 = vector.shape_cast %157 : vector<128xf32> to vector<1x128xf32>
    %c4 = arith.constant 4 : index
    %c0_60 = arith.constant 0 : index
    %159 = vector.load %arg14[%c4, %c0_60] : memref<8x128xf32, #tpu.memory_space<vmem>>, vector<1x128xf32>
    tpu.vector_store %arg14[%c4, %c0_60], %158 {strides = array<i32>} : memref<8x128xf32, #tpu.memory_space<vmem>>, vector<1x128xf32>,
    %160 = vector.extract_strided_slice %60 {offsets = [5, 0], sizes = [1, 128], strides = [1, 1]} : vector<8x128xi32> to vector<1x128xi32>
    %161 = vector.shape_cast %160 : vector<1x128xi32> to vector<128xi32>
    %162 = vector.shape_cast %161 : vector<128xi32> to vector<1x128xi32>
    %163 = vector.broadcast %162 : vector<1x128xi32> to vector<32x128xi32>
    %164 = arith.cmpi eq, %62, %163 : vector<32x128xi32>
    %165 = arith.extui %164 : vector<32x128xi1> to vector<32x128xi32>
    %166 = arith.sitofp %165 : vector<32x128xi32> to vector<32x128xf32>
    %167 = vector.extract_strided_slice %61 {offsets = [5, 0], sizes = [1, 128], strides = [1, 1]} : vector<8x128xi32> to vector<1x128xi32>
    %168 = vector.shape_cast %167 : vector<1x128xi32> to vector<128xi32>
    %169 = vector.shape_cast %168 : vector<128xi32> to vector<1x128xi32>
    %170 = vector.broadcast %169 : vector<1x128xi32> to vector<32x128xi32>
    %171 = arith.cmpi eq, %62, %170 : vector<32x128xi32>
    %172 = arith.extui %171 : vector<32x128xi1> to vector<32x128xi32>
    %173 = arith.sitofp %172 : vector<32x128xi32> to vector<32x128xf32>
    %cst_61 = arith.constant dense<0.000000e+00> : vector<32x128xf32>
    %174 = tpu.matmul %59, %173, %cst_61 {dimension_numbers = #tpu.dot_dimension_numbers<[1], [0], [0], [1], [0, 0, 1, 1], [], []>} : vector<32x32xf32>, vector<32x128xf32>, vector<32x128xf32> -> vector<32x128xf32>
    %175 = arith.mulf %166, %174 : vector<32x128xf32>
    %cst_62 = arith.constant dense<0.000000e+00> : vector<128xf32>
    %176 = vector.multi_reduction <add>, %175, %cst_62 [0] : vector<32x128xf32> to vector<128xf32>
    %177 = vector.shape_cast %176 : vector<128xf32> to vector<1x128xf32>
    %c5 = arith.constant 5 : index
    %c0_63 = arith.constant 0 : index
    %178 = vector.load %arg14[%c5, %c0_63] : memref<8x128xf32, #tpu.memory_space<vmem>>, vector<1x128xf32>
    tpu.vector_store %arg14[%c5, %c0_63], %177 {strides = array<i32>} : memref<8x128xf32, #tpu.memory_space<vmem>>, vector<1x128xf32>,
    return
  }
  func.func @transform_0(%arg0: i32) -> (i32, i32) {
    %c0_i32 = arith.constant 0 : i32
    %c0_i32_0 = arith.constant 0 : i32
    %c0_i32_1 = arith.constant 0 : i32
    return %c0_i32, %c0_i32_0 : i32, i32
  }
  func.func @transform_1(%arg0: i32) -> (i32, i32) {
    %c0_i32 = arith.constant 0 : i32
    %c0_i32_0 = arith.constant 0 : i32
    %c0_i32_1 = arith.constant 0 : i32
    return %c0_i32, %c0_i32_0 : i32, i32
  }
  func.func @transform_2(%arg0: i32) -> (i32, i32) {
    %c0_i32 = arith.constant 0 : i32
    %c0_i32_0 = arith.constant 0 : i32
    %c0_i32_1 = arith.constant 0 : i32
    return %c0_i32, %c0_i32_0 : i32, i32
  }
  func.func @transform_3(%arg0: i32) -> (i32, i32) {
    %c0_i32 = arith.constant 0 : i32
    %c0_i32_0 = arith.constant 0 : i32
    %c0_i32_1 = arith.constant 0 : i32
    return %c0_i32, %c0_i32_0 : i32, i32
  }
  func.func @transform_4(%arg0: i32) -> (i32, i32) {
    %c0_i32 = arith.constant 0 : i32
    %c0_i32_0 = arith.constant 0 : i32
    %c0_i32_1 = arith.constant 0 : i32
    return %c0_i32, %c0_i32_0 : i32, i32
  }
  func.func @transform_5(%arg0: i32) -> (i32, i32) {
    %c0_i32 = arith.constant 0 : i32
    %c0_i32_0 = arith.constant 0 : i32
    %c0_i32_1 = arith.constant 0 : i32
    return %c0_i32, %c0_i32_0 : i32, i32
  }
  func.func @transform_6(%arg0: i32) -> (i32, i32) {
    %c0_i32 = arith.constant 0 : i32
    %c0_i32_0 = arith.constant 0 : i32
    %c0_i32_1 = arith.constant 0 : i32
    return %c0_i32, %c0_i32_0 : i32, i32
  }
  func.func @transform_7(%arg0: i32) -> (i32, i32) {
    %c0_i32 = arith.constant 0 : i32
    %c0_i32_0 = arith.constant 0 : i32
    %c0_i32_1 = arith.constant 0 : i32
    return %c0_i32, %c0_i32_0 : i32, i32
  }
  func.func @transform_8(%arg0: i32) -> (i32, i32) {
    %c0_i32 = arith.constant 0 : i32
    %c0_i32_0 = arith.constant 0 : i32
    %c0_i32_1 = arith.constant 0 : i32
    return %c0_i32, %c0_i32_0 : i32, i32
  }
  func.func @transform_9(%arg0: i32) -> (i32, i32) {
    %c0_i32 = arith.constant 0 : i32
    %c0_i32_0 = arith.constant 0 : i32
    %c0_i32_1 = arith.constant 0 : i32
    return %c0_i32, %c0_i32_0 : i32, i32
  }
  func.func @transform_10(%arg0: i32) -> (i32, i32) {
    %c0_i32 = arith.constant 0 : i32
    %c0_i32_0 = arith.constant 0 : i32
    %c0_i32_1 = arith.constant 0 : i32
    return %c0_i32, %c0_i32_0 : i32, i32
  }
  func.func @transform_11(%arg0: i32) -> (i32, i32) {
    %c0_i32 = arith.constant 0 : i32
    %c0_i32_0 = arith.constant 0 : i32
    %c0_i32_1 = arith.constant 0 : i32
    return %c0_i32, %c0_i32_0 : i32, i32
  }
  func.func @transform_12(%arg0: i32) -> (i32, i32) {
    %c0_i32 = arith.constant 0 : i32
    %c0_i32_0 = arith.constant 0 : i32
    %c0_i32_1 = arith.constant 0 : i32
    return %c0_i32, %c0_i32_0 : i32, i32
  }
  func.func @transform_13(%arg0: i32) -> (i32, i32) {
    %c0_i32 = arith.constant 0 : i32
    %c0_i32_0 = arith.constant 0 : i32
    %c0_i32_1 = arith.constant 0 : i32
    return %c0_i32, %c0_i32_0 : i32, i32
  }
}

</mosaic_0001>

<bundles_post_ra>
// kernel: tpu_custom_call.1
= control target key start
LH: loop header
LB: loop body
LE: loop exit
PB: predicated region body
PF: predicated region fallthrough
CT: control target
= control target key end

     0   :  { %18 = vsyncpa [#allocation3], 0  ;;  %s2857_s0 = inlined_call_operand.hbm [shape: bf16[16,16], index: 0, kind: input, shape index: {}]   ;;  %s2858_s1 = inlined_call_operand.hbm [shape: bf16[16,16], index: 1, kind: input, shape index: {}]   ;;  %s2859_s2 = inlined_call_operand.hbm [shape: bf16[16,16], index: 2, kind: input, shape index: {}]   ;;  %s2860_s3 = inlined_call_operand.vmem [shape: bf16[16,128], index: 3, kind: input, shape index: {}]   ;;  %s2861_s4 = inlined_call_operand.hbm [shape: bf16[16,128], index: 4, kind: input, shape index: {}]   ;;  %s2862_s5 = inlined_call_operand.hbm [shape: bf16[128,128], index: 5, kind: input, shape index: {}]   ;;  %s2863_s6 = inlined_call_operand.hbm [shape: bf16[128,128], index: 6, kind: input, shape index: {}]   ;;  %s2864_s7 = inlined_call_operand.hbm [shape: bf16[128,128], index: 7, kind: input, shape index: {}]   ;;  %s2865_s8 = inlined_call_operand.vmem [shape: f32[1,128], index: 8, kind: input, shape index: {}]   ;;  %s2866_s9 = inlined_call_operand.vmem [shape: f32[1,128], index: 9, kind: input, shape index: {}]   ;;  %s2867_s10 = inlined_call_operand.vmem [shape: f32[1,128], index: 10, kind: input, shape index: {}]   ;;  %s2868_s11 = inlined_call_operand.vmem [shape: s32[8,128], index: 11, kind: input, shape index: {}]   ;;  %s2869_s12 = inlined_call_operand.vmem [shape: s32[8,128], index: 12, kind: input, shape index: {}]   ;;  %s2870_s13 = inlined_call_operand.hbm [shape: f32[8,128], index: 13, kind: output, shape index: {}]  }
   0x1   :  { %19 = vsyncpa [#allocation6], 0 }
   0x2   :  { %20 = vsyncpa [#allocation9], 0 }
   0x3   :  { %21 = vsyncpa [#allocation12], 0 }
   0x4   :  { %22 = vsyncpa [#allocation4], 0  ;;  %s2305_s25 = smov [#allocation5]   ;;  %s2306_s27 = smov [#allocation8]  }
   0x5   :  { %s40_s26 = sshll.u32 %s2305_s25, 4  ;;  %s66_s28 = sshll.u32 %s2306_s27, 4  ;;  %s41_s26 = int_to_ptr.vmem [resolvable:$true] %s40_s26  ;;  %s2388_s28 = int_to_ptr.vmem [resolvable:$true] %s66_s28 }
   0x6   :  { %s2119_s14 = scalar_lea.hbm %s2858_s1, 128 }
   0x7   :  { %p2120_p0 = scmp.ne.s32.totalorder %s2858_s1, %s2119_s14  ;;  %p2123_p1 = scmp.lt.u32.totalorder %s2119_s14, %s2858_s1 }
   0x9   :  { %p2125_p2 = pnand %p2123_p1, %p2120_p0 }
   0xb   :  { %2128 = shalt.err (!%p2125_p2)
}
   0xc   :  { %s2129_s19 = scalar_lea.vmem %s41_s26, 128  ;;  %p2134_p4 = scmp.lt.s32.totalorder %s41_s26, %s41_s26 }
   0xd   :  { %p2130_p3 = scmp.ne.s32.totalorder %s41_s26, %s2129_s19  ;;  %p2135_p5 = scmp.lt.s32.totalorder %s2129_s19, %s2129_s19 }
   0xf   :  { %p2136_p6 = por %p2135_p5, %p2134_p4 }
  0x11   :  { %p2137_p7 = pnand %p2136_p6, %p2130_p3 }
  0x13   :  { %2140 = shalt.err (!%p2137_p7)
}
  0x14   :  { %s2307_s20 = smov 64   ;;  %s2308_s21 = smov 4  }
  0x15   :  { %46 = dma.hbm_to_vmem [thread:$0]  %s2858_s1, 128, %s41_s26, [#allocation6], %s2307_s20, %s2307_s20, %s2308_s21  }
  0x16   :  { %s2141_s27 = scalar_lea.hbm %s2861_s4, 128 }
  0x17   :  { %p2142_p8 = scmp.ne.s32.totalorder %s2861_s4, %s2141_s27  ;;  %p2145_p9 = scmp.lt.u32.totalorder %s2141_s27, %s2861_s4 }
  0x19   :  { %p2147_p10 = pnand %p2145_p9, %p2142_p8 }
  0x1b   :  { %2150 = shalt.err (!%p2147_p10)
}
  0x1c   :  { %s2151_s16 = scalar_lea.vmem %s2388_s28, 128  ;;  %p2156_p12 = scmp.lt.s32.totalorder %s2388_s28, %s2388_s28 }
  0x1d   :  { %p2152_p11 = scmp.ne.s32.totalorder %s2388_s28, %s2151_s16  ;;  %p2157_p13 = scmp.lt.s32.totalorder %s2151_s16, %s2151_s16 }
  0x1f   :  { %p2158_p0 = por %p2157_p13, %p2156_p12 }
  0x21   :  { %p2159_p1 = pnand %p2158_p0, %p2152_p11 }
  0x23   :  { %2162 = shalt.err (!%p2159_p1)
}
  0x24   :  { %72 = dma.hbm_to_vmem [thread:$0]  %s2861_s4, 128, %s2388_s28, [#allocation9], %s2307_s20, %s2307_s20, %s2308_s21  }
  0x25   :  { %s2309_s17 = smov [#allocation11]   ;;  %s2310_s19 = smov [#allocation2]  }
  0x26   :  { %s90_s18 = sshll.u32 %s2309_s17, 4  ;;  %s28_s22 = sshll.u32 %s2310_s19, 4  ;;  %s91_s18 = int_to_ptr.vmem [resolvable:$true] %s90_s18  ;;  %s2425_s22 = int_to_ptr.vmem [resolvable:$true] %s28_s22 }
  0x27   :  { %s2163_s25 = scalar_lea.hbm %s2863_s6, 1024 }
  0x28   :  { %p2164_p2 = scmp.ne.s32.totalorder %s2863_s6, %s2163_s25  ;;  %p2167_p3 = scmp.lt.u32.totalorder %s2163_s25, %s2863_s6 }
  0x2a   :  { %p2169_p4 = pnand %p2167_p3, %p2164_p2 }
  0x2c   :  { %2172 = shalt.err (!%p2169_p4)
}
  0x2d   :  { %s2173_s4 = scalar_lea.vmem %s91_s18, 1024  ;;  %p2178_p6 = scmp.lt.s32.totalorder %s91_s18, %s91_s18 }
  0x2e   :  { %p2174_p5 = scmp.ne.s32.totalorder %s91_s18, %s2173_s4  ;;  %p2179_p7 = scmp.lt.s32.totalorder %s2173_s4, %s2173_s4 }
  0x30   :  { %p2180_p8 = por %p2179_p7, %p2178_p6 }
  0x32   :  { %p2181_p9 = pnand %p2180_p8, %p2174_p5 }
  0x34   :  { %2184 = shalt.err (!%p2181_p9)
}
  0x35   :  { %96 = dma.hbm_to_vmem [thread:$0]  %s2863_s6, 1024, %s91_s18, [#allocation12], %s2307_s20, %s2307_s20, %s2308_s21  }
  0x36   :  { %s2185_s26 = scalar_lea.hbm %s2857_s0, 128 }
  0x37   :  { %p2186_p10 = scmp.ne.s32.totalorder %s2857_s0, %s2185_s26  ;;  %p2189_p11 = scmp.lt.u32.totalorder %s2185_s26, %s2857_s0 }
  0x39   :  { %p2191_p12 = pnand %p2189_p11, %p2186_p10 }
  0x3b   :  { %2194 = shalt.err (!%p2191_p12)
}
  0x3c   :  { %s2195_s25 = scalar_lea.vmem %s2425_s22, 128  ;;  %p2200_p0 = scmp.lt.s32.totalorder %s2425_s22, %s2425_s22 }
  0x3d   :  { %p2196_p13 = scmp.ne.s32.totalorder %s2425_s22, %s2195_s25  ;;  %p2201_p1 = scmp.lt.s32.totalorder %s2195_s25, %s2195_s25 }
  0x3f   :  { %p2202_p2 = por %p2201_p1, %p2200_p0 }
  0x41   :  { %p2203_p3 = pnand %p2202_p2, %p2196_p13 }
  0x43   :  { %2206 = shalt.err (!%p2203_p3)
}
  0x44   :  { %34 = dma.hbm_to_vmem [thread:$0]  %s2857_s0, 128, %s2425_s22, [#allocation3], %s2307_s20, %s2307_s20, %s2308_s21  }
  0x45   :  { %s2311_s27 = smov [#allocation7]   ;;  %s2312_s30 = smov [#allocation10]  }
  0x46   :  { %s52_s29 = sshll.u32 %s2311_s27, 4  ;;  %s78_s14 = sshll.u32 %s2312_s30, 4  ;;  %s53_s29 = int_to_ptr.vmem [resolvable:$true] %s52_s29  ;;  %s2462_s14 = int_to_ptr.vmem [resolvable:$true] %s78_s14 }
  0x47   :  { %s2207_s15 = scalar_lea.hbm %s2859_s2, 128 }
  0x48   :  { %p2208_p4 = scmp.ne.s32.totalorder %s2859_s2, %s2207_s15  ;;  %p2211_p5 = scmp.lt.u32.totalorder %s2207_s15, %s2859_s2 }
  0x4a   :  { %p2213_p6 = pnand %p2211_p5, %p2208_p4 }
  0x4c   :  { %2216 = shalt.err (!%p2213_p6)
}
  0x4d   :  { %s2217_s0 = scalar_lea.vmem %s53_s29, 128  ;;  %p2222_p8 = scmp.lt.s32.totalorder %s53_s29, %s53_s29 }
  0x4e   :  { %p2218_p7 = scmp.ne.s32.totalorder %s53_s29, %s2217_s0  ;;  %p2223_p9 = scmp.lt.s32.totalorder %s2217_s0, %s2217_s0 }
  0x50   :  { %p2224_p10 = por %p2223_p9, %p2222_p8 }
  0x52   :  { %p2225_p11 = pnand %p2224_p10, %p2218_p7 }
  0x54   :  { %2228 = shalt.err (!%p2225_p11)
}
  0x55   :  { %58 = dma.hbm_to_vmem [thread:$0]  %s2859_s2, 128, %s53_s29, [#allocation6], %s2307_s20, %s2307_s20, %s2308_s21  }
  0x56   :  { %s2229_s25 = scalar_lea.hbm %s2862_s5, 1024 }
  0x57   :  { %p2230_p12 = scmp.ne.s32.totalorder %s2862_s5, %s2229_s25  ;;  %p2233_p13 = scmp.lt.u32.totalorder %s2229_s25, %s2862_s5 }
  0x59   :  { %p2235_p0 = pnand %p2233_p13, %p2230_p12 }
  0x5b   :  { %2238 = shalt.err (!%p2235_p0)
}
  0x5c   :  { %s2239_s4 = scalar_lea.vmem %s2462_s14, 1024  ;;  %p2244_p2 = scmp.lt.s32.totalorder %s2462_s14, %s2462_s14 }
  0x5d   :  { %p2240_p1 = scmp.ne.s32.totalorder %s2462_s14, %s2239_s4  ;;  %p2245_p3 = scmp.lt.s32.totalorder %s2239_s4, %s2239_s4 }
  0x5f   :  { %p2246_p4 = por %p2245_p3, %p2244_p2 }
  0x61   :  { %p2247_p5 = pnand %p2246_p4, %p2240_p1 }
  0x63   :  { %2250 = shalt.err (!%p2247_p5)
}
  0x64   :  { %84 = dma.hbm_to_vmem [thread:$0]  %s2862_s5, 1024, %s2462_s14, [#allocation9], %s2307_s20, %s2307_s20, %s2308_s21  }
  0x65   :  { %s2313_s28 = smov [#allocation13]   ;;  %s2251_s26 = scalar_lea.hbm %s2864_s7, 1024 }
  0x66   :  { %s102_s15 = sshll.u32 %s2313_s28, 4  ;;  %p2252_p6 = scmp.ne.s32.totalorder %s2864_s7, %s2251_s26  ;;  %s103_s15 = int_to_ptr.vmem [resolvable:$true] %s102_s15 }
  0x67   :  { %p2255_p7 = scmp.lt.u32.totalorder %s2251_s26, %s2864_s7 }
  0x69   :  { %p2257_p8 = pnand %p2255_p7, %p2252_p6 }
  0x6b   :  { %2260 = shalt.err (!%p2257_p8)
}
  0x6c   :  { %s2261_s23 = scalar_lea.vmem %s103_s15, 1024  ;;  %p2266_p10 = scmp.lt.s32.totalorder %s103_s15, %s103_s15 }
  0x6d   :  { %p2262_p9 = scmp.ne.s32.totalorder %s103_s15, %s2261_s23  ;;  %p2267_p11 = scmp.lt.s32.totalorder %s2261_s23, %s2261_s23 }
  0x6f   :  { %p2268_p12 = por %p2267_p11, %p2266_p10 }
  0x71   :  { %p2269_p13 = pnand %p2268_p12, %p2262_p9 }
  0x73   :  { %2272 = shalt.err (!%p2269_p13)
}
  0x74   :  { %108 = dma.hbm_to_vmem [thread:$0]  %s2864_s7, 1024, %s103_s15, [#allocation12], %s2307_s20, %s2307_s20, %s2308_s21  }
  0x75   :  { %2295 = dma.done.wait [#allocation3], 128  }
  0x76   :  { %2296 = vsyncadd [#allocation3], 4294967168 }
  0x77   :  { %2297 = dma.done.wait [#allocation6], 256  }
  0x78   :  { %2298 = vsyncadd [#allocation6], 4294967040 }
  0x79   :  { %2299 = dma.done.wait [#allocation9], 1152  }
  0x7a   :  { %2300 = vsyncadd [#allocation9], 4294966144 }
  0x7b   :  { %2301 = dma.done.wait [#allocation12], 2048  }
  0x7c   :  { %2302 = vsyncadd [#allocation12], 4294965248  ;;  %v2314_v0 = vmov 0.0   ;;  %vm2315_vm0 = vmmov 0   ;;  %v2075_v1 = vld [vmem:[%s2860_s3] sm:$0xff]   ;;  %vm164_vm1 = vcmask 130048  }
  0x7d   :  { %1830 = vmatprep.subr.bf16.mxu0 %v2314_v0  ;;  %792 = vst [vmem:[#allocation14] sm:$0xff] %v2314_v0  ;;  %1832 = vmatprep.mubr.msk.bf16.mxu0 %vm2315_vm0, %v2314_v0  ;;  %v141_v2 = vld [vmem:[#allocation2] sm:$0xff]   ;;  %v2078_v8 = vld [vmem:[#allocation10 + $0x8] sm:$0xff]   ;;  %v2079_v9 = vld [vmem:[#allocation10 + $0x10] sm:$0xff]  }
  0x7e   :  { %1836 = vmatprep.subr.bf16.mxu1 %v2314_v0  ;;  %1852 = vmatprep.mubr.msk.bf16.mxu1 %vm2315_vm0, %v2314_v0  ;;  %v162_v3 = vunpack.c.l.bf16 %v141_v2  ;;  %v163_v4 = vunpack.c.h.bf16 %v141_v2  ;;  %v2077_v5 = vld [vmem:[#allocation10] sm:$0xff]   ;;  %v2080_v10 = vld [vmem:[#allocation10 + $0x18] sm:$0xff]   ;;  %v2082_v12 = vld [vmem:[#allocation10 + $0x28] sm:$0xff]  }
  0x7f   :  { %1831 = vmatpush3.bf16.msra.mxu0 %v2075_v1  ;;  %1837 = vmatpush3.bf16.msra.mxu1 %v2077_v5  ;;  %v2081_v11 = vld [vmem:[#allocation10 + $0x20] sm:$0xff]   ;;  %v2083_v13 = vld [vmem:[#allocation10 + $0x30] sm:$0xff]   ;;  %v330_v14 = vld [vmem:[#allocation5] sm:$0xff]  }
  0x80   :  { %1856 = vmatprep.subr.bf16.mxu0 %v2314_v0  ;;  %v165_v6 = vsel %vm164_vm1, %v162_v3, 0.0  ;;  %v168_v7 = vsel %vm164_vm1, %v163_v4, 0.0  ;;  %1838 = vmatprep.subr.bf16.mxu1 %v2314_v0  ;;  %v2084_v15 = vld [vmem:[#allocation10 + $0x38] sm:$0xff]   ;;  %v510_v16 = vld [vmem:[#allocation7] sm:$0xff]   ;;  %v349_v17 = vunpack.c.l.bf16 %v330_v14  ;;  %v350_v18 = vunpack.c.h.bf16 %v330_v14  ;;  %v2088_v20 = vld [vmem:[#allocation11] sm:$0xff]  }
  0x81   :  { %166 = vadd.xlane.f32.xlu0 %v165_v6  ;;  %v531_v19 = vunpack.c.l.bf16 %v510_v16  ;;  %v2089_v23 = vld [vmem:[#allocation11 + $0x8] sm:$0xff]   ;;  %v532_v25 = vunpack.c.h.bf16 %v510_v16  ;;  %v2090_v26 = vld [vmem:[#allocation11 + $0x10] sm:$0xff]   ;;  %v2092_v28 = vld [vmem:[#allocation11 + $0x18] sm:$0xff]  }
  0x82   :  { %1833 = vmatmul.mubr.msk.bf16.vlgmr.msra.gmra.mrb[0].mxu0 %vm164_vm1, %v141_v2  ;;  %v351_v21 = vsel %vm164_vm1, %v349_v17, 0.0  ;;  %v354_v24 = vsel %vm164_vm1, %v350_v18, 0.0  ;;  %v2094_v29 = vld [vmem:[#allocation11 + $0x20] sm:$0xff]   ;;  %v2096_v30 = vld [vmem:[#allocation11 + $0x28] sm:$0xff]   ;;  %v2098_v31 = vld [vmem:[#allocation11 + $0x30] sm:$0xff]  }
  0x83   :  { %1857 = vmatpush3.bf16.msra.mxu0 %v2075_v1  ;;  %1858 = vmatprep.mubr.msk.bf16.mxu0 %vm2315_vm0, %v2314_v0  ;;  %v533_v22 = vsel %vm164_vm1, %v531_v19, 0.0  ;;  %v536_v27 = vsel %vm164_vm1, %v532_v25, 0.0  ;;  %v2086_v44 = vld [vmem:[#allocation8] sm:$0xff]   ;;  %v2091_v46 = vld [vmem:[#allocation13] sm:$0xff]   ;;  %v2093_v47 = vld [vmem:[#allocation13 + $0x8] sm:$0xff]  }
  0x84   :  { %1862 = vmatprep.subr.bf16.mxu0 %v2314_v0  ;;  %1839 = vmatpush3.bf16.msra.mxu1 %v2078_v8  ;;  %v2095_v48 = vld [vmem:[#allocation13 + $0x10] sm:$0xff]   ;;  %v2097_v49 = vld [vmem:[#allocation13 + $0x18] sm:$0xff]   ;;  %v2099_v59 = vld [vmem:[#allocation13 + $0x20] sm:$0xff]  }
  0x85   :  { %169 = vadd.xlane.f32.xlu0 %v168_v7  ;;  %1840 = vmatprep.subr.bf16.mxu1 %v2314_v0  ;;  %v2100_v61 = vld [vmem:[#allocation11 + $0x38] sm:$0xff]   ;;  %v2101_v2 = vld [vmem:[#allocation13 + $0x28] sm:$0xff]   ;;  %v2102_v3 = vld [vmem:[#allocation13 + $0x30] sm:$0xff]  }
  0x86   :  { %352 = vadd.xlane.f32.xlu1 %v351_v21  ;;  %v2103_v4 = vld [vmem:[#allocation13 + $0x38] sm:$0xff]  }
  0x88   :  { %1841 = vmatpush3.bf16.msra.mxu1 %v2079_v9  ;;  %v1613_v9 = vld [vmem:[%s2865_s8] ss:$0 sm:$0xff] }
  0x89   :  { %1842 = vmatprep.subr.bf16.mxu1 %v2314_v0  ;;  %534 = vadd.xlane.f32.xlu0 %v533_v22 }
  0x8a   :  { %1859 = vmatmul.mubr.msk.bf16.vlgmr.msra.gmra.mrb[4].mxu0 %vm164_vm1, %v330_v14  ;;  %355 = vadd.xlane.f32.xlu1 %v354_v24 }
  0x8b   :  { %1878 = vmatprep.mubr.msk.bf16.mxu0 %vm2315_vm0, %v2314_v0  ;;  %1863 = vmatpush3.bf16.msra.mxu0 %v2088_v20 }
  0x8c   :  { %1843 = vmatpush3.bf16.msra.mxu1 %v2080_v10  ;;  %1864 = vmatprep.subr.bf16.mxu0 %v2314_v0 }
  0x8d   :  { %1844 = vmatprep.subr.bf16.mxu1 %v2314_v0 }
  0x8e   :  { %537 = vadd.xlane.f32.xlu1 %v536_v27 }
  0x8f   :  { %1865 = vmatpush3.bf16.msra.mxu0 %v2089_v23 }
  0x90   :  { %1845 = vmatpush3.bf16.msra.mxu1 %v2081_v11  ;;  %1866 = vmatprep.subr.bf16.mxu0 %v2314_v0 }
  0x91   :  { %1846 = vmatprep.subr.bf16.mxu1 %v2314_v0 }
  0x93   :  { %1867 = vmatpush3.bf16.msra.mxu0 %v2090_v26 }
  0x94   :  { %1847 = vmatpush3.bf16.msra.mxu1 %v2082_v12  ;;  %1868 = vmatprep.subr.bf16.mxu0 %v2314_v0 }
  0x95   :  { %1848 = vmatprep.subr.bf16.mxu1 %v2314_v0 }
  0x97   :  { %1869 = vmatpush3.bf16.msra.mxu0 %v2092_v28 }
  0x98   :  { %1849 = vmatpush3.bf16.msra.mxu1 %v2083_v13  ;;  %1870 = vmatprep.subr.bf16.mxu0 %v2314_v0 }
  0x99   :  { %1850 = vmatprep.subr.bf16.mxu1 %v2314_v0 }
  0x9b   :  { %1871 = vmatpush3.bf16.msra.mxu0 %v2094_v29 }
  0x9c   :  { %1851 = vmatpush3.bf16.msra.mxu1 %v2084_v15  ;;  %1872 = vmatprep.subr.bf16.mxu0 %v2314_v0 }
  0x9d   :  { %1882 = vmatprep.subr.bf16.mxu1 %v2314_v0 }
  0x9f   :  { %1873 = vmatpush3.bf16.msra.mxu0 %v2096_v30 }
  0xa0   :  { %1874 = vmatprep.subr.bf16.mxu0 %v2314_v0 }
  0xa3   :  { %1875 = vmatpush3.bf16.msra.mxu0 %v2098_v31 }
  0xa4   :  { %1876 = vmatprep.subr.bf16.mxu0 %v2314_v0 }
  0xa7   :  { %1877 = vmatpush3.bf16.msra.mxu0 %v2100_v61 }
 0x10e   :  { %v167_v32 = vpop.xlane.xlu0 %166 }
 0x10f   :  { %v171_v35 = vmax.f32 %v167_v32, 1.0  ;;  %v787_v32 = vlaneseq }
 0x112   :  { %v170_v33 = vpop.xlane.xlu0 %169 }
 0x113   :  { %v172_v34 = vmax.f32 %v170_v33, 1.0  ;;  %v353_v50 = vpop.xlane.xlu1 %352  ;;  %v2574_v33 = vshrl.u32 %v787_v32, 7 }
 0x114   :  { %v357_v52 = vmax.f32 %v353_v50, 1.0 }
 0x115   :  { %2107 = vrcp.f32 %v172_v34  ;;  %v2579_v34 = vld [vmem:[%s2869_s12] sm:$0xff]  ;;  %v1332_v61 = vsub.s32 4, %v2574_v33 }
 0x116   :  { %2109 = vrcp.f32 %v171_v35  ;;  %v535_v5 = vpop.xlane.xlu0 %534  ;;  %v2582_v35 = vadd.s32 8, %v2574_v33 }
 0x117   :  { %v356_v51 = vpop.xlane.xlu1 %355  ;;  %2111 = vrcp.f32 %v357_v52  ;;  %v539_v7 = vmax.f32 %v535_v5, 1.0 }
 0x118   :  { %v358_v53 = vmax.f32 %v356_v51, 1.0 }
 0x11a   :  { %2113 = vrcp.f32 %v358_v53 }
 0x11b   :  { %v538_v6 = vpop.xlane.xlu1 %537  ;;  %2115 = vrcp.f32 %v539_v7 }
 0x11c   :  { %v540_v8 = vmax.f32 %v538_v6, 1.0 }
 0x11e   :  { %2117 = vrcp.f32 %v540_v8 }
 0x11f   :  { %v2108_v36 = vpop.eup %2107 }
 0x120   :  { %v2110_v39 = vpop.eup %2109 }
 0x121   :  { %v2112_v54 = vpop.eup %2111 }
 0x124   :  { %v2114_v55 = vpop.eup %2113 }
 0x125   :  { %v2116_v18 = vpop.eup %2115 }
 0x128   :  { %v2118_v20 = vpop.eup %2117 }
 0x155   :  { %v223_v37 = vpop.f32.mrb[0].mxu0 }
 0x156   :  { %v1834_v38 = vpop.f32.mrb[1].mxu0  ;;  %v230_v41 = vmul.f32 %v2110_v39, %v223_v37  ;;  %v2586_v37 = vadd.s32 16, %v2574_v33 }
 0x157   :  { %v226_v40 = vpop.f32.mrb[2].mxu0  ;;  %v2589_v38 = vadd.s32 24, %v2574_v33 }
 0x158   :  { %v231_v42 = vmul.f32 %v2108_v36, %v226_v40  ;;  %v1835_v43 = vpop.f32.mrb[3].mxu0  ;;  %v1070_v36 = vsub.s32 2, %v2574_v33  ;;  %v2316_v40 = vmov 1.0|1.0  }
 0x15a   :  { %v232_v45 = vpack.c.bf16 %v231_v42, %v230_v41  ;;  %v1087_v39 = vrot.slane %v2579_v34, %v1070_v36  ;;  %v1624_v41 = vld [vmem:[%s2866_s9] ss:$0 sm:$0xff] }
 0x15b   :  { %v1636_v42 = vld [vmem:[%s2867_s10] ss:$0 sm:$0xff] }
 0x15c   :  { %1853 = vmatmul.mubr.bf16.vlgmr.msra.gmra.mrb[0].mxu1 %v232_v45  ;;  %vm1088_vm2 = vcmp.eq.s32.totalorder %v2574_v33, %v1087_v39  ;;  %vm1089_vm3 = vcmp.eq.s32.totalorder %v2582_v35, %v1087_v39  ;;  %vm1090_vm4 = vcmp.eq.s32.totalorder %v2586_v37, %v1087_v39  ;;  %vm1091_vm5 = vcmp.eq.s32.totalorder %v2589_v38, %v1087_v39 }
 0x15d   :  { %1883 = vmatpush3.bf16.msra.mxu1 %v2086_v44  ;;  %1884 = vmatprep.mubr.msk.bf16.mxu1 %vm2315_vm0, %v2314_v0  ;;  %v403_v56 = vpop.f32.mrb[4].mxu0  ;;  %vm2030_vm6 = vmpackc.low %vm1089_vm3, %vm1088_vm2  ;;  %v795_v44 = vsub.s32 0, %v2574_v33 }
 0x15e   :  { %1888 = vmatprep.subr.bf16.mxu1 %v2314_v0  ;;  %v410_v57 = vmul.f32 %v2112_v54, %v403_v56  ;;  %v1860_v58 = vpop.f32.mrb[5].mxu0  ;;  %vm2034_vm7 = vmpackc.low %vm1091_vm5, %vm1090_vm4 }
 0x15f   :  { %v406_v60 = vpop.f32.mrb[6].mxu0  ;;  %v812_v54 = vrot.slane %v2579_v34, %v795_v44 }
 0x160   :  { %v411_v62 = vmul.f32 %v2114_v55, %v406_v60  ;;  %v1861_v63 = vpop.f32.mrb[7].mxu0  ;;  %v939_v60 = vsub.s32 1, %v2574_v33 }
 0x161   :  { %vm813_vm8 = vcmp.eq.s32.totalorder %v2574_v33, %v812_v54  ;;  %vm814_vm9 = vcmp.eq.s32.totalorder %v2582_v35, %v812_v54  ;;  %vm815_vm11 = vcmp.eq.s32.totalorder %v2586_v37, %v812_v54  ;;  %vm816_vm12 = vcmp.eq.s32.totalorder %v2589_v38, %v812_v54 }
 0x162   :  { %v412_v1 = vpack.c.bf16 %v411_v62, %v410_v57  ;;  %vm2014_vm10 = vmpackc.low %vm814_vm9, %vm813_vm8  ;;  %v956_v62 = vrot.slane %v2579_v34, %v939_v60  ;;  %v1349_v63 = vrot.slane %v2579_v34, %v1332_v61 }
 0x163   :  { %vm2018_vm13 = vmpackc.low %vm816_vm12, %vm815_vm11 }
 0x164   :  { %1885 = vmatmul.mubr.msk.bf16.vlgmr.msra.gmra.mrb[4].mxu1 %vm164_vm1, %v510_v16  ;;  %1879 = vmatmul.mubr.bf16.vlgmr.msra.gmra.mrb[8].mxu0 %v412_v1  ;;  %vm957_vm14 = vcmp.eq.s32.totalorder %v2574_v33, %v956_v62  ;;  %vm958_vm15 = vcmp.eq.s32.totalorder %v2582_v35, %v956_v62  ;;  %vm1351_vm2 = vcmp.eq.s32.totalorder %v2582_v35, %v1349_v63 }
 0x165   :  { %1889 = vmatpush3.bf16.msra.mxu1 %v2091_v46  ;;  %1904 = vmatprep.mubr.msk.bf16.mxu1 %vm2315_vm0, %v2314_v0  ;;  %vm1350_vm0 = vcmp.eq.s32.totalorder %v2574_v33, %v1349_v63  ;;  %vm2633_vm1 = vmpackc.low %vm958_vm15, %vm957_vm14  ;;  %vm959_vm4 = vcmp.eq.s32.totalorder %v2586_v37, %v956_v62  ;;  %vm960_vm5 = vcmp.eq.s32.totalorder %v2589_v38, %v956_v62 }
 0x166   :  { %1890 = vmatprep.subr.bf16.mxu1 %v2314_v0  ;;  %vm2641_vm3 = vmpackc.low %vm1351_vm2, %vm1350_vm0  ;;  %vm1353_vm8 = vcmp.eq.s32.totalorder %v2589_v38, %v1349_v63 }
 0x167   :  { %vm2656_vm9 = vmpackc.low %vm960_vm5, %vm959_vm4 }
 0x169   :  { %1891 = vmatpush3.bf16.msra.mxu1 %v2093_v47 }
 0x16a   :  { %1892 = vmatprep.subr.bf16.mxu1 %v2314_v0 }
 0x16d   :  { %1893 = vmatpush3.bf16.msra.mxu1 %v2095_v48 }
 0x16e   :  { %1894 = vmatprep.subr.bf16.mxu1 %v2314_v0 }
 0x171   :  { %1895 = vmatpush3.bf16.msra.mxu1 %v2097_v49 }
 0x172   :  { %1896 = vmatprep.subr.bf16.mxu1 %v2314_v0 }
 0x175   :  { %1897 = vmatpush3.bf16.msra.mxu1 %v2099_v59 }
 0x176   :  { %1898 = vmatprep.subr.bf16.mxu1 %v2314_v0 }
 0x179   :  { %1899 = vmatpush3.bf16.msra.mxu1 %v2101_v2 }
 0x17a   :  { %1900 = vmatprep.subr.bf16.mxu1 %v2314_v0 }
 0x17d   :  { %1901 = vmatpush3.bf16.msra.mxu1 %v2102_v3  ;;  %v1201_v3 = vsub.s32 3, %v2574_v33 }
 0x17e   :  { %1902 = vmatprep.subr.bf16.mxu1 %v2314_v0 }
 0x17f   :  { %v1218_v5 = vrot.slane %v2579_v34, %v1201_v3 }
 0x181   :  { %1903 = vmatpush3.bf16.msra.mxu1 %v2103_v4  ;;  %vm1219_vm11 = vcmp.eq.s32.totalorder %v2574_v33, %v1218_v5  ;;  %vm1220_vm12 = vcmp.eq.s32.totalorder %v2582_v35, %v1218_v5  ;;  %vm1221_vm14 = vcmp.eq.s32.totalorder %v2586_v37, %v1218_v5  ;;  %vm1222_vm15 = vcmp.eq.s32.totalorder %v2589_v38, %v1218_v5 }
 0x182   :  { %2031 = vmatprep.subr.msk.bf16.mxu1 %vm2030_vm6, %v2316_v40  ;;  %vm2042_vm0 = vmpackc.low %vm1222_vm15, %vm1221_vm14 }
 0x22f   :  { %v321_v10 = vpop.f32.mrb[0].mxu1 }
 0x230   :  { %v322_v11 = vadd.f32 %v1613_v9, %v321_v10  ;;  %v1854_v12 = vpop.f32.mrb[1].mxu1 }
 0x231   :  { %v324_v13 = vpop.f32.mrb[2].mxu1 }
 0x232   :  { %v328_v14 = vmax.f32 %v322_v11, 0.0  ;;  %v2569_v15 = vadd.f32 %v1613_v9, %v324_v13  ;;  %v1855_v16 = vpop.f32.mrb[3].mxu1  ;;  %v1463_v9 = vsub.s32 5, %v2574_v33  ;;  %v2729_v13 = vld [vmem:[%s2868_s11] sm:$0xff]  ;;  %s2317_s11 = smov [#allocation14]  }
 0x233   :  { %s1598_s27 = sshll.u32 %s2317_s11, 4  ;;  %s1599_s27 = int_to_ptr.vmem [resolvable:$true] %s1598_s27 }
 0x234   :  { %v329_v17 = vmax.f32 %v2569_v15, 0.0  ;;  %1916 = vmatprep.mubr.f32.mxu0 %v328_v14  ;;  %v1480_v12 = vrot.slane %v2579_v34, %v1463_v9  ;;  %v1071_v15 = vrot.slane %v2729_v13, %v1070_v36  ;;  %s2273_s30 = scalar_lea.vmem %s1599_s27, 128  ;;  %p2278_p1 = scmp.lt.s32.totalorder %s1599_s27, %s1599_s27 }
 0x235   :  { %p2274_p0 = scmp.ne.s32.totalorder %s1599_s27, %s2273_s30  ;;  %p2279_p2 = scmp.lt.s32.totalorder %s2273_s30, %s2273_s30 }
 0x236   :  { %v2006_v19 = vpack.c.bf16 %v329_v17, %v328_v14  ;;  %vm1482_vm2 = vcmp.eq.s32.totalorder %v2582_v35, %v1480_v12  ;;  %vm1483_vm4 = vcmp.eq.s32.totalorder %v2586_v37, %v1480_v12  ;;  %vm1484_vm5 = vcmp.eq.s32.totalorder %v2589_v38, %v1480_v12 }
 0x237   :  { %v591_v21 = vpop.f32.mrb[4].mxu1  ;;  %v501_v28 = vpop.f32.mrb[8].mxu0  ;;  %v796_v14 = vrot.slane %v2729_v13, %v795_v44  ;;  %vm1075_vm14 = vcmp.eq.s32.totalorder %v2589_v38, %v1071_v15  ;;  %p2280_p3 = por %p2279_p2, %p2278_p1 }
 0x238   :  { %v1886_v22 = vpop.f32.mrb[5].mxu1  ;;  %2007 = vmatprep.subr.bf16.mxu0 %v2006_v19  ;;  %v598_v24 = vmul.f32 %v2116_v18, %v591_v21  ;;  %v1880_v29 = vpop.f32.mrb[9].mxu0  ;;  %v502_v43 = vadd.f32 %v1624_v41, %v501_v28  ;;  %v2746_v18 = vrot.slane %v2729_v13, %v939_v60  ;;  %v2753_v21 = vrot.slane %v2729_v13, %v1332_v61 }
 0x239   :  { %v594_v23 = vpop.f32.mrb[6].mxu1  ;;  %2009 = vmatpush3.bf16.xpose.msra.mxu0 %v2006_v19  ;;  %v504_v30 = vpop.f32.mrb[10].mxu0  ;;  %p2281_p4 = pnand %p2280_p3, %p2274_p0 }
 0x23a   :  { %v599_v25 = vmul.f32 %v2118_v20, %v594_v23  ;;  %v1887_v26 = vpop.f32.mrb[7].mxu1  ;;  %v1881_v31 = vpop.f32.mrb[11].mxu0  ;;  %v505_v46 = vadd.f32 %v1624_v41, %v504_v30  ;;  %v508_v50 = vmax.f32 %v502_v43, 0.0  ;;  %vm942_vm15 = vcmp.eq.s32.totalorder %v2582_v35, %v2746_v18 }
 0x23b   :  { %v1680_v41 = vsel %vm1075_vm14, 1.0, %v2314_v0  ;;  %v1662_v44 = vsel %vm942_vm15, 1.0, %v2314_v0 }
 0x23c   :  { %v600_v27 = vpack.c.bf16 %v599_v25, %v598_v24  ;;  %v509_v55 = vmax.f32 %v505_v46, 0.0 }
 0x23e   :  { %1905 = vmatmul.mubr.bf16.vlgmr.msra.gmra.mrb[8].mxu1 %v600_v27 }
 0x23f   :  { %2033 = vmatpush3.bf16.msk.msra.mxu1 %vm2030_vm6, %v2316_v40  ;;  %vm825_vm6 = vcmask 261120  }
 0x240   :  { %2035 = vmatprep.subr.msk.bf16.mxu1 %vm2034_vm7, %v2316_v40 }
 0x243   :  { %2037 = vmatpush3.bf16.msk.msra.mxu1 %vm2034_vm7, %v2316_v40  ;;  %vm1352_vm7 = vcmp.eq.s32.totalorder %v2586_v37, %v1349_v63 }
 0x244   :  { %2047 = vmatprep.subr.msk.bf16.mxu1 %vm2641_vm3, %v2316_v40 }
 0x311   :  { %v689_v45 = vpop.f32.mrb[8].mxu1 }
 0x312   :  { %v690_v47 = vadd.f32 %v1636_v42, %v689_v45  ;;  %v1906_v48 = vpop.f32.mrb[9].mxu1 }
 0x313   :  { %v692_v49 = vpop.f32.mrb[10].mxu1 }
 0x314   :  { %v696_v51 = vmax.f32 %v690_v47, 0.0  ;;  %v693_v52 = vadd.f32 %v1636_v42, %v692_v49  ;;  %v1907_v53 = vpop.f32.mrb[11].mxu1 }
 0x316   :  { %v698_v56 = vadd.f32 %v696_v51, %v508_v50  ;;  %v697_v57 = vmax.f32 %v693_v52, 0.0  ;;  %v2782_v50 = vrot.slane %v2729_v13, %v1201_v3 }
 0x318   :  { %v699_v58 = vadd.f32 %v697_v57, %v509_v55 }
 0x31a   :  { %v2010_v59 = vpack.c.bf16 %v699_v58, %v698_v56 }
 0x31c   :  { %2011 = vmatprep.subr.bf16.mxu0 %v2010_v59 }
 0x31d   :  { %2013 = vmatpush3.bf16.xpose.msra.mxu0 %v2010_v59 }
 0x31e   :  { %2015 = vmatprep.subr.msk.bf16.mxu0 %vm2014_vm10, %v2316_v40 }
 0x324   :  { %1917 = vmatmul.mubr.f32.vlgmr.msra.gmra.mrb[12].mxu0 %v329_v17 }
 0x325   :  { %1919 = vmatprep.mubr.f32.mxu0 %v698_v56  ;;  %2017 = vmatpush3.bf16.msk.msra.mxu0 %vm2014_vm10, %v2316_v40  ;;  %vm2662_vm10 = vmpackc.low %vm1353_vm8, %vm1352_vm7  ;;  %vm798_vm8 = vcmp.eq.s32.totalorder %v2582_v35, %v796_v14 }
 0x326   :  { %2019 = vmatprep.subr.msk.bf16.mxu0 %vm2018_vm13, %v2316_v40  ;;  %vm2058_vm7 = vmpackc.low %vm1484_vm5, %vm1483_vm4  ;;  %v1646_v16 = vsel %vm798_vm8, 1.0, %v2314_v0  ;;  %vm1336_vm4 = vcmp.eq.s32.totalorder %v2586_v37, %v2753_v21  ;;  %vm944_vm5 = vcmp.eq.s32.totalorder %v2589_v38, %v2746_v18  ;;  %vm1204_vm8 = vcmp.eq.s32.totalorder %v2582_v35, %v2782_v50 }
 0x327   :  { %v1711_v3 = vsel %vm1336_vm4, 1.0, %v2314_v0 }
 0x328   :  { %1920 = vmatmul.mubr.f32.gmra.mrb[14].mxu0 %v699_v58 }
 0x329   :  { %2021 = vmatpush3.bf16.msk.msra.mxu0 %vm2018_vm13, %v2316_v40  ;;  %vm2038_vm13 = vmpackc.low %vm1220_vm12, %vm1219_vm11  ;;  %vm799_vm11 = vcmp.eq.s32.totalorder %v2586_v37, %v796_v14  ;;  %vm1074_vm12 = vcmp.eq.s32.totalorder %v2586_v37, %v1071_v15 }
 0x32a   :  { %2023 = vmatprep.subr.msk.bf16.mxu0 %vm2633_vm1, %v2316_v40  ;;  %v1647_v30 = vsel %vm799_vm11, 1.0, %v2314_v0  ;;  %v1679_v31 = vsel %vm1074_vm12, 1.0, %v2314_v0 }
 0x3f7   :  { %v1918_v4 = vpop.f32.mrb[12].mxu0 }
 0x3f8   :  { %v766_v6 = vpop.f32.mrb[13].mxu0 }
 0x3f9   :  { %1930 = vmatprep.mubr.msk.f32.mxu0 %vm825_vm6, %v766_v6  ;;  %1958 = vmatprep.mubr.msk.f32.mxu1 %vm825_vm6, %v766_v6 }
 0x3fa   :  { %1931 = vmatmul.mubr.msk.f32.vlgmr.msra.gmra.mrb[16].mxu0 %vm825_vm6, %v1918_v4  ;;  %1959 = vmatmul.mubr.msk.f32.vlgmr.msra.gmra.mrb[12].mxu1 %vm825_vm6, %v1918_v4 }
 0x3fb   :  { %2025 = vmatpush3.bf16.msk.msra.mxu0 %vm2633_vm1, %v2316_v40  ;;  %v1921_v10 = vpop.f32.mrb[14].mxu0  ;;  %2049 = vmatpush3.bf16.msk.msra.mxu1 %vm2641_vm3, %v2316_v40  ;;  %vm1481_vm1 = vcmp.eq.s32.totalorder %v2574_v33, %v1480_v12 }
 0x3fc   :  { %v776_v11 = vpop.f32.mrb[15].mxu0  ;;  %2027 = vmatprep.subr.msk.bf16.mxu0 %vm2656_vm9, %v2316_v40  ;;  %2051 = vmatprep.subr.msk.bf16.mxu1 %vm2662_vm10, %v2316_v40  ;;  %vm2054_vm3 = vmpackc.low %vm1482_vm2, %vm1481_vm1  ;;  %vm941_vm1 = vcmp.eq.s32.totalorder %v2574_v33, %v2746_v18  ;;  %vm1334_vm2 = vcmp.eq.s32.totalorder %v2574_v33, %v2753_v21 }
 0x3fd   :  { %1933 = vmatprep.mubr.msk.f32.mxu0 %vm825_vm6, %v776_v11  ;;  %1961 = vmatprep.mubr.msk.f32.mxu1 %vm825_vm6, %v776_v11  ;;  %v1661_v48 = vsel %vm941_vm1, 1.0, %v2314_v0  ;;  %v1709_v49 = vsel %vm1334_vm2, 1.0, %v2314_v0 }
 0x3fe   :  { %1934 = vmatmul.mubr.msk.f32.gmra.mrb[18].mxu0 %vm825_vm6, %v1921_v10  ;;  %1962 = vmatmul.mubr.msk.f32.gmra.mrb[14].mxu1 %vm825_vm6, %v1921_v10 }
 0x3ff   :  { %2029 = vmatpush3.bf16.msk.msra.mxu0 %vm2656_vm9, %v2316_v40  ;;  %1944 = vmatprep.mubr.msk.f32.mxu0 %vm825_vm6, %v766_v6  ;;  %vm1073_vm9 = vcmp.eq.s32.totalorder %v2582_v35, %v1071_v15 }
 0x400   :  { %2053 = vmatpush3.bf16.msk.msra.mxu1 %vm2662_vm10, %v2316_v40  ;;  %1986 = vmatprep.mubr.msk.f32.mxu1 %vm825_vm6, %v766_v6  ;;  %vm797_vm10 = vcmp.eq.s32.totalorder %v2574_v33, %v796_v14  ;;  %v1678_v17 = vsel %vm1073_vm9, 1.0, %v2314_v0  ;;  %vm1203_vm9 = vcmp.eq.s32.totalorder %v2574_v33, %v2782_v50 }
 0x401   :  { %2039 = vmatprep.subr.msk.bf16.mxu0 %vm2038_vm13, %v2316_v40  ;;  %v1645_v19 = vsel %vm797_vm10, 1.0, %v2314_v0  ;;  %vm1206_vm10 = vcmp.eq.s32.totalorder %v2589_v38, %v2782_v50 }
 0x402   :  { %1945 = vmatmul.mubr.msk.f32.vlgmr.msra.gmra.mrb[20].mxu0 %vm825_vm6, %v1918_v4 }
 0x403   :  { %2041 = vmatpush3.bf16.msk.msra.mxu0 %vm2038_vm13, %v2316_v40  ;;  %1987 = vmatmul.mubr.msk.f32.vlgmr.msra.gmra.mrb[16].mxu1 %vm825_vm6, %v1918_v4  ;;  %vm800_vm13 = vcmp.eq.s32.totalorder %v2589_v38, %v796_v14 }
 0x404   :  { %1947 = vmatprep.mubr.msk.f32.mxu0 %vm825_vm6, %v776_v11  ;;  %1989 = vmatprep.mubr.msk.f32.mxu1 %vm825_vm6, %v776_v11 }
 0x405   :  { %2043 = vmatprep.subr.msk.bf16.mxu0 %vm2042_vm0, %v2316_v40 }
 0x406   :  { %1948 = vmatmul.mubr.msk.f32.gmra.mrb[22].mxu0 %vm825_vm6, %v1921_v10 }
 0x407   :  { %2045 = vmatpush3.bf16.msk.msra.mxu0 %vm2042_vm0, %v2316_v40  ;;  %1990 = vmatmul.mubr.msk.f32.gmra.mrb[18].mxu1 %vm825_vm6, %v1921_v10  ;;  %vm1335_vm0 = vcmp.eq.s32.totalorder %v2582_v35, %v2753_v21 }
 0x408   :  { %1972 = vmatprep.mubr.msk.f32.mxu0 %vm825_vm6, %v766_v6  ;;  %2055 = vmatprep.subr.msk.bf16.mxu0 %vm2054_vm3, %v2316_v40  ;;  %v1710_v47 = vsel %vm1335_vm0, 1.0, %v2314_v0 }
 0x40a   :  { %1973 = vmatmul.mubr.msk.f32.vlgmr.msra.gmra.mrb[24].mxu0 %vm825_vm6, %v1918_v4 }
 0x40b   :  { %2057 = vmatpush3.bf16.msk.msra.mxu0 %vm2054_vm3, %v2316_v40  ;;  %1975 = vmatprep.mubr.msk.f32.mxu0 %vm825_vm6, %v776_v11  ;;  %vm943_vm3 = vcmp.eq.s32.totalorder %v2586_v37, %v2746_v18  ;;  %v1694_v18 = vsel %vm1204_vm8, 1.0, %v2314_v0 }
 0x40c   :  { %2059 = vmatprep.subr.msk.bf16.mxu0 %vm2058_vm7, %v2316_v40  ;;  %v1663_v2 = vsel %vm943_vm3, 1.0, %v2314_v0 }
 0x40e   :  { %1976 = vmatmul.mubr.msk.f32.gmra.mrb[26].mxu0 %vm825_vm6, %v1921_v10 }
 0x40f   :  { %2061 = vmatpush3.bf16.msk.msra.mxu0 %vm2058_vm7, %v2316_v40  ;;  %2000 = vmatprep.mubr.msk.f32.mxu0 %vm825_vm6, %v766_v6  ;;  %v1648_v40 = vsel %vm800_vm13, 1.0, %v2314_v0  ;;  %vm1337_vm7 = vcmp.eq.s32.totalorder %v2589_v38, %v2753_v21  ;;  %v1693_v21 = vsel %vm1203_vm9, 1.0, %v2314_v0 }
 0x412   :  { %2001 = vmatmul.mubr.msk.f32.vlgmr.msra.gmra.mrb[28].mxu0 %vm825_vm6, %v1918_v4 }
 0x413   :  { %2003 = vmatprep.mubr.msk.f32.mxu0 %vm825_vm6, %v776_v11  ;;  %v1712_v11 = vsel %vm1337_vm7, 1.0, %v2314_v0 }
 0x416   :  { %2004 = vmatmul.mubr.msk.f32.gmra.mrb[30].mxu0 %vm825_vm6, %v1921_v10  ;;  %vm1072_vm6 = vcmp.eq.s32.totalorder %v2574_v33, %v1071_v15  ;;  %v1664_v10 = vsel %vm944_vm5, 1.0, %v2314_v0  ;;  %v2811_v15 = vrot.slane %v2729_v13, %v1463_v9 }
 0x417   :  { %v1677_v20 = vsel %vm1072_vm6, 1.0, %v2314_v0  ;;  %vm1205_vm6 = vcmp.eq.s32.totalorder %v2586_v37, %v2782_v50 }
 0x418   :  { %vm1466_vm11 = vcmp.eq.s32.totalorder %v2582_v35, %v2811_v15  ;;  %vm1465_vm12 = vcmp.eq.s32.totalorder %v2574_v33, %v2811_v15  ;;  %vm1467_vm13 = vcmp.eq.s32.totalorder %v2586_v37, %v2811_v15  ;;  %vm1468_vm14 = vcmp.eq.s32.totalorder %v2589_v38, %v2811_v15 }
 0x4cd   :  { %v1932_v22 = vpop.f32.mrb[16].mxu0  ;;  %v1960_v23 = vpop.f32.mrb[12].mxu1 }
 0x4ce   :  { %v924_v24 = vmul.f32 %v1932_v22, %v1646_v16  ;;  %v1186_v25 = vmul.f32 %v1960_v23, %v1678_v17  ;;  %v904_v26 = vpop.f32.mrb[17].mxu0  ;;  %v1166_v27 = vpop.f32.mrb[13].mxu1 }
 0x4cf   :  { %v923_v28 = vmul.f32 %v1645_v19, %v904_v26  ;;  %v1185_v29 = vmul.f32 %v1677_v20, %v1166_v27 }
 0x4d1   :  { %v927_v32 = vadd.f32 %v924_v24, %v923_v28  ;;  %v1189_v34 = vadd.f32 %v1186_v25, %v1185_v29  ;;  %v1935_v36 = vpop.f32.mrb[18].mxu0  ;;  %v1963_v39 = vpop.f32.mrb[14].mxu1 }
 0x4d2   :  { %v914_v42 = vpop.f32.mrb[19].mxu0  ;;  %v1176_v43 = vpop.f32.mrb[15].mxu1  ;;  %v926_v51 = vmul.f32 %v1935_v36, %v1648_v40  ;;  %v1188_v52 = vmul.f32 %v1963_v39, %v1680_v41  ;;  %v1695_v39 = vsel %vm1205_vm6, 1.0, %v2314_v0 }
 0x4d3   :  { %v925_v45 = vmul.f32 %v1647_v30, %v914_v42  ;;  %v1187_v46 = vmul.f32 %v1679_v31, %v1176_v43 }
 0x4d5   :  { %v928_v53 = vadd.f32 %v927_v32, %v925_v45  ;;  %v1190_v54 = vadd.f32 %v1189_v34, %v1187_v46  ;;  %v1946_v55 = vpop.f32.mrb[20].mxu0  ;;  %v1696_v46 = vsel %vm1206_vm10, 1.0, %v2314_v0 }
 0x4d6   :  { %v1055_v56 = vmul.f32 %v1946_v55, %v1662_v44  ;;  %v1988_v57 = vpop.f32.mrb[16].mxu1  ;;  %v1035_v58 = vpop.f32.mrb[21].mxu0 }
 0x4d7   :  { %v929_v59 = vadd.f32 %v928_v53, %v926_v51  ;;  %v1191_v60 = vadd.f32 %v1190_v54, %v1188_v52  ;;  %v1448_v61 = vmul.f32 %v1988_v57, %v1710_v47  ;;  %v1054_v62 = vmul.f32 %v1661_v48, %v1035_v58  ;;  %v1428_v63 = vpop.f32.mrb[17].mxu1 }
 0x4d8   :  { %v1447_v1 = vmul.f32 %v1709_v49, %v1428_v63  ;;  %v1726_v48 = vsel %vm1466_vm11, 1.0, %v2314_v0  ;;  %v1725_v54 = vsel %vm1465_vm12, 1.0, %v2314_v0 }
 0x4d9   :  { %v930_v4 = vrot.slane %v929_v59, 4  ;;  %v1192_v5 = vrot.slane %v1191_v60, 4  ;;  %v1058_v6 = vadd.f32 %v1055_v56, %v1054_v62  ;;  %v1949_v7 = vpop.f32.mrb[22].mxu0 }
 0x4da   :  { %v1451_v8 = vadd.f32 %v1448_v61, %v1447_v1  ;;  %v1991_v12 = vpop.f32.mrb[18].mxu1  ;;  %v1045_v14 = vpop.f32.mrb[23].mxu0  ;;  %v1057_v23 = vmul.f32 %v1949_v7, %v1664_v10  ;;  %v1727_v1 = vsel %vm1467_vm13, 1.0, %v2314_v0  ;;  %v1728_v7 = vsel %vm1468_vm14, 1.0, %v2314_v0 }
 0x4db   :  { %v931_v16 = vadd.f32 %v930_v4, %v929_v59  ;;  %v1193_v17 = vadd.f32 %v1192_v5, %v1191_v60  ;;  %v1056_v19 = vmul.f32 %v1663_v2, %v1045_v14  ;;  %v1438_v20 = vpop.f32.mrb[19].mxu1  ;;  %v1450_v26 = vmul.f32 %v1991_v12, %v1712_v11 }
 0x4dc   :  { %v1449_v22 = vmul.f32 %v1711_v3, %v1438_v20 }
 0x4dd   :  { %v932_v9 = vrot.slane %v931_v16, 2  ;;  %v1194_v13 = vrot.slane %v1193_v17, 2  ;;  %v1059_v24 = vadd.f32 %v1058_v6, %v1056_v19  ;;  %v1974_v25 = vpop.f32.mrb[24].mxu0 }
 0x4de   :  { %v1452_v27 = vadd.f32 %v1451_v8, %v1449_v22  ;;  %v1317_v28 = vmul.f32 %v1974_v25, %v1694_v18  ;;  %v1297_v29 = vpop.f32.mrb[25].mxu0 }
 0x4df   :  { %v933_v30 = vadd.f32 %v932_v9, %v931_v16  ;;  %v1195_v31 = vadd.f32 %v1194_v13, %v1193_v17  ;;  %v1060_v32 = vadd.f32 %v1059_v24, %v1057_v23  ;;  %v1316_v34 = vmul.f32 %v1693_v21, %v1297_v29 }
 0x4e0   :  { %v1453_v36 = vadd.f32 %v1452_v27, %v1450_v26 }
 0x4e1   :  { %v934_v40 = vrot.slane %v933_v30, 1  ;;  %v1196_v41 = vrot.slane %v1195_v31, 1  ;;  %v1061_v42 = vrot.slane %v1060_v32, 4  ;;  %v1320_v43 = vadd.f32 %v1317_v28, %v1316_v34  ;;  %v1977_v44 = vpop.f32.mrb[26].mxu0 }
 0x4e2   :  { %v1454_v45 = vrot.slane %v1453_v36, 4  ;;  %v1307_v47 = vpop.f32.mrb[27].mxu0  ;;  %v1319_v56 = vmul.f32 %v1977_v44, %v1696_v46 }
 0x4e3   :  { %v935_v49 = vadd.f32 %v934_v40, %v933_v30  ;;  %v1197_v51 = vadd.f32 %v1196_v41, %v1195_v31  ;;  %v1062_v33 = vadd.f32 %v1061_v42, %v1060_v32  ;;  %v1318_v52 = vmul.f32 %v1695_v39, %v1307_v47 }
 0x4e4   :  { %v1455_v53 = vadd.f32 %v1454_v45, %v1453_v36 }
 0x4e5   :  { %936 = vst [vmem:[#allocation14] sm:$0x1] %v935_v49  ;;  %1198 = vst [vmem:[#allocation14 + $0x2] sm:$0x1] %v1197_v51  ;;  %v1063_v55 = vrot.slane %v1062_v33, 2  ;;  %v1321_v57 = vadd.f32 %v1320_v43, %v1318_v52  ;;  %v2002_v50 = vpop.f32.mrb[28].mxu0 }
 0x4e6   :  { %v1456_v58 = vrot.slane %v1455_v53, 2  ;;  %v1579_v59 = vmul.f32 %v2002_v50, %v1726_v48  ;;  %v1559_v35 = vpop.f32.mrb[29].mxu0 }
 0x4e7   :  { %v1064_v60 = vadd.f32 %v1063_v55, %v1062_v33  ;;  %v1322_v61 = vadd.f32 %v1321_v57, %v1319_v56  ;;  %v1578_v62 = vmul.f32 %v1725_v54, %v1559_v35 }
 0x4e8   :  { %v1457_v63 = vadd.f32 %v1456_v58, %v1455_v53 }
 0x4e9   :  { %v1065_v2 = vrot.slane %v1064_v60, 1  ;;  %v1323_v3 = vrot.slane %v1322_v61, 4  ;;  %v1582_v4 = vadd.f32 %v1579_v59, %v1578_v62  ;;  %v2005_v5 = vpop.f32.mrb[30].mxu0 }
 0x4ea   :  { %v1458_v6 = vrot.slane %v1457_v63, 1  ;;  %v1569_v37 = vpop.f32.mrb[31].mxu0  ;;  %v1581_v16 = vmul.f32 %v2005_v5, %v1728_v7 }
 0x4eb   :  { %v1066_v8 = vadd.f32 %v1065_v2, %v1064_v60  ;;  %v1324_v10 = vadd.f32 %v1323_v3, %v1322_v61  ;;  %v1580_v11 = vmul.f32 %v1727_v1, %v1569_v37 }
 0x4ec   :  { %v1459_v12 = vadd.f32 %v1458_v6, %v1457_v63 }
 0x4ed   :  { %1067 = vst [vmem:[#allocation14 + $0x1] sm:$0x1] %v1066_v8  ;;  %v1325_v14 = vrot.slane %v1324_v10, 2  ;;  %v1583_v17 = vadd.f32 %v1582_v4, %v1580_v11 }
 0x4ee   :  { %1460 = vst [vmem:[#allocation14 + $0x4] sm:$0x1] %v1459_v12 }
 0x4ef   :  { %v1326_v38 = vadd.f32 %v1325_v14, %v1324_v10  ;;  %v1584_v15 = vadd.f32 %v1583_v17, %v1581_v16 }
 0x4f1   :  { %v1327_v19 = vrot.slane %v1326_v38, 1  ;;  %v1585_v20 = vrot.slane %v1584_v15, 4 }
 0x4f3   :  { %v1328_v18 = vadd.f32 %v1327_v19, %v1326_v38  ;;  %v1586_v22 = vadd.f32 %v1585_v20, %v1584_v15 }
 0x4f5   :  { %1329 = vst [vmem:[#allocation14 + $0x3] sm:$0x1] %v1328_v18  ;;  %v1587_v21 = vrot.slane %v1586_v22, 2 }
 0x4f7   :  { %v1588_v9 = vadd.f32 %v1587_v21, %v1586_v22 }
 0x4f9   :  { %v1589_v0 = vrot.slane %v1588_v9, 1 }
 0x4fb   :  { %v1590_v13 = vadd.f32 %v1589_v0, %v1588_v9 }
 0x4fd   :  { %1591 = vst [vmem:[#allocation14 + $0x5] sm:$0x1] %v1590_v13 }
 0x4fe   :  { %2284 = shalt.err (!%p2281_p4)
}
 0x4ff   :  { %s2285_s29 = scalar_lea.hbm %s2870_s13, 128 }
 0x500   :  { %p2286_p5 = scmp.ne.s32.totalorder %s2870_s13, %s2285_s29  ;;  %p2289_p6 = scmp.lt.u32.totalorder %s2285_s29, %s2870_s13 }
 0x502   :  { %p2291_p7 = pnand %p2289_p6, %p2286_p5 }
 0x504   :  { %2294 = shalt.err (!%p2291_p7)
}
 0x505   :  { %1601 = dma.vmem_to_hbm [thread:$0]  %s1599_s27, 128, %s2870_s13, [#allocation4]  }
 0x506   :  { %2303 = dma.done.wait [#allocation4], 128  }
 0x507   :  { %2304 = vsyncadd [#allocation4], 4294967168 }
 0x508   :  { %1605 = vsyncpa [#allocation3], 1 }
 0x509   :  { %1606 = vsyncpa [#allocation6], 1 }
 0x50a   :  { %1607 = vsyncpa [#allocation9], 1 }
 0x50b   :  { %1608 = vsyncpa [#allocation12], 1 }
 0x50c   :  { %1609 = vsyncpa [#allocation4], 1 }

</bundles_post_ra>
